<compile_context>
chip_gen: v6e
topology: v6e:2x2x1
jax: 0.10.0
libtpu: 0.0.40
codegen_flags: <defaults>
</compile_context>

<pallas_src>
import functools
import math

import jax
import jax.numpy as jnp
from jax.experimental import pallas as pl
from jax.experimental.pallas import tpu as pltpu


def _round_up(n, m):
    return ((n + m - 1) // m) * m


def _vmem_capacity_bytes():
    # Generation-aware VMEM capacity (v5e/v6e: 128 MiB, v7x: 64 MiB).
    # Fall back to the smallest (v7x) capacity if the query is unavailable.
    try:
        info = pltpu.get_tpu_info()
        return int(getattr(info, "vmem_capacity_bytes", 64 * 1024 * 1024))
    except Exception:
        return 64 * 1024 * 1024


def _attention_layer_kernel(x_ref, tgt_ref, enc_a_ref, enc_b_ref, mask_ref,
                            w_in_ref, b_in_ref, w_out_ref, b_out_ref,
                            out_ref, *maybe_attn_ref, return_attn):
    bblk, t, c = x_ref.shape
    e_dim = tgt_ref.shape[-1]

    cdt = x_ref.dtype                              # compute dtype of MXU operands
    prec = (jax.lax.Precision.HIGHEST if cdt == jnp.float32
            else jax.lax.Precision.DEFAULT)
    sqrt_half = jnp.float32(math.sqrt(0.5))

    x = x_ref[...]                                 # (Bblk, T, C)   residual
    tgt = tgt_ref[...]                             # (Bblk, T, E)
    mask = mask_ref[...]                           # (Bblk, 1, S)   1.0 == padded

    # ---- in_projection on the flattened (Bblk*T, C) matrix (big MXU M dim) ----
    p2 = jnp.dot(x.reshape(bblk * t, c), w_in_ref[...],
                 preferred_element_type=jnp.float32, precision=prec)
    p = (p2 + b_in_ref[...]).reshape(bblk, t, e_dim)
    p = (p + tgt) * sqrt_half                      # f32, (Bblk, T, E)

    # ---- scores = bmm(p, encoder_out[0]); masked fill; softmax over S ----
    scores = jnp.einsum('bte,bes->bts', p.astype(cdt), enc_a_ref[...],
                        preferred_element_type=jnp.float32, precision=prec)
    scores = jnp.where(mask > 0.5, -jnp.inf, scores)

    m = jnp.max(scores, axis=-1, keepdims=True)
    e = jnp.exp(scores - m)
    denom = jnp.sum(e, axis=-1, keepdims=True)
    inv = pl.reciprocal(denom, approx=True)        # EUP, not a VALU divide

    # length renormalisation: s_valid * rsqrt(s_valid) == sqrt(#valid positions)
    s_valid = jnp.float32(mask.shape[-1]) - jnp.sum(mask, axis=-1, keepdims=True)
    renorm = s_valid * jax.lax.rsqrt(s_valid)      # (Bblk, 1, 1)

    if return_attn:
        attn = e * inv                             # (Bblk, T, S)
        maybe_attn_ref[0][...] = attn.astype(maybe_attn_ref[0].dtype)
        ctx = jnp.einsum('bts,bse->bte', attn.astype(cdt), enc_b_ref[...],
                         preferred_element_type=jnp.float32, precision=prec)
        ctx = ctx * renorm
    else:
        # fold softmax normalisation and length renorm into a single multiply
        w = (e * (inv * renorm)).astype(cdt)
        ctx = jnp.einsum('bts,bse->bte', w, enc_b_ref[...],
                         preferred_element_type=jnp.float32, precision=prec)

    # ---- out_projection on the flattened matrix + residual ----
    o2 = jnp.dot(ctx.astype(cdt).reshape(bblk * t, e_dim), w_out_ref[...],
                 preferred_element_type=jnp.float32, precision=prec)
    o = (o2 + b_out_ref[...]).reshape(bblk, t, c)
    o = (o + x) * sqrt_half
    out_ref[...] = o.astype(out_ref.dtype)


def attention_layer(x, target_embedding, encoder_a, encoder_b,
                    encoder_padding_mask, w_in, b_in, w_out, b_out,
                    *, return_attn=True, block_b=None, compute_dtype=None):
    """ConvS2S AttentionLayer forward.

    x:                (B, T, C)   conv features (residual)
    target_embedding: (B, T, E)
    encoder_a:        (B, E, S)   encoder_out[0] (keys, pre-transposed for bmm)
    encoder_b:        (B, S, E)   encoder_out[1] (values)
    encoder_padding_mask: (B, S) bool (True == padded) or None
    w_in:  (C, E) = in_projection.weight.T   b_in:  (E,)
    w_out: (E, C) = out_projection.weight.T  b_out: (C,)
    compute_dtype: dtype of the big MXU operands (defaults to the input dtype;
                   pass jnp.bfloat16 for the halved HBM/VMEM-traffic fast path).
    """
    B, T, C = x.shape
    E = target_embedding.shape[-1]
    S = encoder_b.shape[1]
    f32 = jnp.float32

    if compute_dtype is None:
        compute_dtype = (x.dtype if x.dtype in (jnp.dtype(jnp.bfloat16),
                                                jnp.dtype(jnp.float32)) else f32)
    cdt = jnp.dtype(compute_dtype)
    csize = cdt.itemsize
    out_itemsize = jnp.dtype(x.dtype).itemsize
    sub = 16 if csize == 2 else 8                  # bf16 sublane packing is (16,128)

    # lane/sublane friendly padded sizes -> unmasked, lane-dense vector stores
    T_p = _round_up(T, sub)
    C_p = _round_up(C, 128)
    E_p = _round_up(E, 128)
    S_p = _round_up(S, 128)

    # ---- generation-aware VMEM budgets ----
    vmem_cap = _vmem_capacity_bytes()
    vmem_limit = min(vmem_cap * 3 // 4, vmem_cap - 24 * 1024 * 1024)   # 40 MiB (v7x) / 96 MiB (v5e,v6e)
    vmem_limit = max(vmem_limit, 32 * 1024 * 1024)
    block_budget = max(8 * 1024 * 1024, vmem_limit - 12 * 1024 * 1024)

    # per-batch-row bytes: double-buffered inputs/outputs + f32 softmax temporaries;
    # fixed bytes: (double-buffered) weight/bias blocks.
    attn_out_bytes = (csize * T_p * S_p) if return_attn else 0
    per_b_bytes = (2 * (csize * (T_p * C_p + T_p * E_p + E_p * S_p + S_p * E_p)
                        + 4 * S_p
                        + out_itemsize * T_p * C_p + attn_out_bytes)
                   + 4 * (2 * T_p * S_p + 2 * T_p * E_p))
    fixed_bytes = 2 * (csize * 2 * C_p * E_p + 4 * (E_p + C_p))

    if block_b is None:
        m_target = 512 if block_budget >= 48 * 1024 * 1024 else 256
        want = max(1, -(-m_target // T_p))
        cap = max(1, (block_budget - fixed_bytes) // per_b_bytes)
        block_b = int(max(1, min(want, cap, B)))
    if B >= 2:
        # keep >= 2 parallel grid blocks so both TensorCores on dual-core parts
        # (v7x) get work; negligible cost on single-core v5e / v6e.
        block_b = min(block_b, -(-B // 2))
    block_b = max(1, int(block_b))
    B_p = _round_up(B, block_b)
    num_blocks = B_p // block_b

    # ---- cast (once, wrapper-side) fused with padding; skip no-op pads ----
    def cast_pad3(a, dtype, s0, s1, s2):
        a = a.astype(dtype)
        p0, p1, p2_ = s0 - a.shape[0], s1 - a.shape[1], s2 - a.shape[2]
        if p0 or p1 or p2_:
            a = jnp.pad(a, ((0, p0), (0, p1), (0, p2_)))
        return a

    def cast_pad2(a, dtype, s0, s1):
        a = a.astype(dtype)
        p0, p1 = s0 - a.shape[0], s1 - a.shape[1]
        if p0 or p1:
            a = jnp.pad(a, ((0, p0), (0, p1)))
        return a

    x_p = cast_pad3(x, cdt, B_p, T_p, C_p)
    tgt_p = cast_pad3(target_embedding, cdt, B_p, T_p, E_p)
    enc_a_p = cast_pad3(encoder_a, cdt, B_p, E_p, S_p)
    enc_b_p = cast_pad3(encoder_b, cdt, B_p, S_p, E_p)

    # mask: 1.0 == padded.  Padded source lanes are masked for real batch rows
    # (keeps softmax and length renorm identical to the unpadded problem);
    # padding batch rows get an all-zero mask so no row is fully -inf.
    if encoder_padding_mask is None:
        user_mask = jnp.zeros((B, S), f32)
    else:
        user_mask = encoder_padding_mask.astype(f32)
    mask_p = user_mask
    if S_p != S:
        mask_p = jnp.pad(mask_p, ((0, 0), (0, S_p - S)), constant_values=1.0)
    if B_p != B:
        mask_p = jnp.pad(mask_p, ((0, B_p - B), (0, 0)), constant_values=0.0)
    mask_p = mask_p.reshape(B_p, 1, S_p)

    w_in_p = cast_pad2(w_in, cdt, C_p, E_p)
    w_out_p = cast_pad2(w_out, cdt, E_p, C_p)
    b_in_p = jnp.pad(b_in.astype(f32), (0, E_p - E)).reshape(1, E_p)
    b_out_p = jnp.pad(b_out.astype(f32), (0, C_p - C)).reshape(1, C_p)

    out_shapes = [jax.ShapeDtypeStruct((B_p, T_p, C_p), x.dtype)]
    out_specs = [pl.BlockSpec((block_b, T_p, C_p), lambda i: (i, 0, 0))]
    if return_attn:
        # attn map written in the compute dtype (bf16 path halves its writeback)
        out_shapes.append(jax.ShapeDtypeStruct((B_p, T_p, S_p), cdt))
        out_specs.append(pl.BlockSpec((block_b, T_p, S_p), lambda i: (i, 0, 0)))

    grid_spec = pltpu.PrefetchScalarGridSpec(
        num_scalar_prefetch=0,
        grid=(num_blocks,),
        in_specs=[
            pl.BlockSpec((block_b, T_p, C_p), lambda i: (i, 0, 0)),   # x
            pl.BlockSpec((block_b, T_p, E_p), lambda i: (i, 0, 0)),   # target_embedding
            pl.BlockSpec((block_b, E_p, S_p), lambda i: (i, 0, 0)),   # encoder_out[0]
            pl.BlockSpec((block_b, S_p, E_p), lambda i: (i, 0, 0)),   # encoder_out[1]
            pl.BlockSpec((block_b, 1, S_p), lambda i: (i, 0, 0)),     # padding mask
            pl.BlockSpec((C_p, E_p), lambda i: (0, 0)),               # W_in^T
            pl.BlockSpec((1, E_p), lambda i: (0, 0)),                 # b_in
            pl.BlockSpec((E_p, C_p), lambda i: (0, 0)),               # W_out^T
            pl.BlockSpec((1, C_p), lambda i: (0, 0)),                 # b_out
        ],
        out_specs=tuple(out_specs),
    )

    kernel = functools.partial(_attention_layer_kernel, return_attn=return_attn)

    res = pl.pallas_call(
        kernel,
        out_shape=tuple(out_shapes),
        grid_spec=grid_spec,
        compiler_params=pltpu.CompilerParams(
            dimension_semantics=("parallel",),
            vmem_limit_bytes=int(vmem_limit)),
    )(x_p, tgt_p, enc_a_p, enc_b_p, mask_p, w_in_p, b_in_p, w_out_p, b_out_p)

    out = res[0][:B, :T, :C]
    if return_attn:
        attn = res[1][:B, :T, :S]
        return out, attn
    return out


def attention_layer_ref(x, tgt, enc_a, enc_b, mask, w_in, b_in, w_out, b_out):
    """Pure-JAX f32 reference mirroring the PyTorch forward."""
    sqrt_half = math.sqrt(0.5)
    residual = x
    p = (jnp.einsum('btc,ce->bte', x, w_in,
                    precision=jax.lax.Precision.HIGHEST) + b_in + tgt) * sqrt_half
    scores = jnp.einsum('bte,bes->bts', p, enc_a,
                        precision=jax.lax.Precision.HIGHEST)
    scores = jnp.where(mask[:, None, :], -jnp.inf, scores)
    attn = jax.nn.softmax(scores, axis=-1)
    ctx = jnp.einsum('bts,bse->bte', attn, enc_b,
                     precision=jax.lax.Precision.HIGHEST)
    s = enc_b.shape[1] - mask.astype(x.dtype).sum(axis=1, keepdims=True)
    s = s[:, :, None]
    ctx = ctx * (s * jax.lax.rsqrt(s))
    out = (jnp.einsum('bte,ec->btc', ctx, w_out,
                      precision=jax.lax.Precision.HIGHEST) + b_out + residual) * sqrt_half
    return out, attn


if __name__ == "__main__":
    B, T, S = 2, 8, 16          # batch, target length, source length
    C, E = 16, 32               # conv_channels, embed_dim

    key = jax.random.PRNGKey(0)
    ks = jax.random.split(key, 8)

    x = jax.random.normal(ks[0], (B, T, C), jnp.float32)
    target_embedding = jax.random.normal(ks[1], (B, T, E), jnp.float32)
    encoder_a = jax.random.normal(ks[2], (B, E, S), jnp.float32)   # encoder_out[0]
    encoder_b = jax.random.normal(ks[3], (B, S, E), jnp.float32)   # encoder_out[1]

    # deterministic "checkpoint": torch Linear weights are (out, in); stored transposed.
    w_in = 0.1 * jax.random.normal(ks[4], (C, E), jnp.float32)     # in_projection.weight.T
    b_in = 0.1 * jax.random.normal(ks[5], (E,), jnp.float32)
    w_out = 0.1 * jax.random.normal(ks[6], (E, C), jnp.float32)    # out_projection.weight.T
    b_out = 0.1 * jax.random.normal(ks[7], (C,), jnp.float32)

    # batch 0 has no padding, batch 1 has its last 4 source positions padded
    lengths = jnp.array([S, S - 4])
    encoder_padding_mask = jnp.arange(S)[None, :] >= lengths[:, None]   # (B, S) bool

    out, attn = attention_layer(x, target_embedding, encoder_a, encoder_b,
                                encoder_padding_mask, w_in, b_in, w_out, b_out)
    out_noattn = attention_layer(x, target_embedding, encoder_a, encoder_b,
                                 encoder_padding_mask, w_in, b_in, w_out, b_out,
                                 return_attn=False)
    # opt-in bf16 fast path (halved HBM/VMEM traffic); looser numerics by design
    out_bf16 = attention_layer(x, target_embedding, encoder_a, encoder_b,
                               encoder_padding_mask, w_in, b_in, w_out, b_out,
                               return_attn=False, compute_dtype=jnp.bfloat16)
    jax.block_until_ready((out, attn, out_noattn, out_bf16))

    out_ref, attn_ref = attention_layer_ref(x, target_embedding, encoder_a,
                                            encoder_b, encoder_padding_mask,
                                            w_in, b_in, w_out, b_out)

    assert out.shape == (B, T, C) and attn.shape == (B, T, S)
    # default path keeps full f32 matmuls; tolerance covers the EUP approx
    # reciprocal and multi-pass MXU f32 rounding.
    assert jnp.allclose(out, out_ref, atol=1e-2, rtol=1e-2)
    assert jnp.allclose(attn, attn_ref, atol=1e-2, rtol=1e-2)
    assert jnp.allclose(out_noattn, out_ref, atol=1e-2, rtol=1e-2)
    assert out_bf16.shape == (B, T, C) and bool(jnp.all(jnp.isfinite(out_bf16)))

    print("KERNEL_OK")
</pallas_src>

<mosaic_0001>
module attributes {stable_mosaic.version = 11 : i64} {
  func.func @_attention_layer_kernel(%arg0: i32, %arg1: memref<1x8x128xf32, #tpu.memory_space<vmem>>, %arg2: memref<1x8x128xf32, #tpu.memory_space<vmem>>, %arg3: memref<1x128x128xf32, #tpu.memory_space<vmem>>, %arg4: memref<1x128x128xf32, #tpu.memory_space<vmem>>, %arg5: memref<1x1x128xf32, #tpu.memory_space<vmem>>, %arg6: memref<128x128xf32, #tpu.memory_space<vmem>>, %arg7: memref<1x128xf32, #tpu.memory_space<vmem>>, %arg8: memref<128x128xf32, #tpu.memory_space<vmem>>, %arg9: memref<1x128xf32, #tpu.memory_space<vmem>>, %arg10: memref<1x8x128xf32, #tpu.memory_space<vmem>>, %arg11: memref<1x8x128xf32, #tpu.memory_space<vmem>>) attributes {dimension_semantics = [#tpu.dimension_semantics<parallel>], iteration_bounds = array<i64: 2>, scalar_prefetch = 0 : i64, scratch_operands = 0 : i64, tpu.core_type = #tpu.core_type<tc>, window_params = [{transform_indices = @transform_0, window_bounds = array<i64: 1, 8, 128>}, {transform_indices = @transform_1, window_bounds = array<i64: 1, 8, 128>}, {transform_indices = @transform_2, window_bounds = array<i64: 1, 128, 128>}, {transform_indices = @transform_3, window_bounds = array<i64: 1, 128, 128>}, {transform_indices = @transform_4, window_bounds = array<i64: 1, 1, 128>}, {pipeline_mode = #tpu.pipeline_mode<synchronous>, transform_indices = @transform_5, window_bounds = array<i64: 128, 128>}, {pipeline_mode = #tpu.pipeline_mode<synchronous>, transform_indices = @transform_6, window_bounds = array<i64: 1, 128>}, {pipeline_mode = #tpu.pipeline_mode<synchronous>, transform_indices = @transform_7, window_bounds = array<i64: 128, 128>}, {pipeline_mode = #tpu.pipeline_mode<synchronous>, transform_indices = @transform_8, window_bounds = array<i64: 1, 128>}, {transform_indices = @transform_9, window_bounds = array<i64: 1, 8, 128>}, {transform_indices = @transform_10, window_bounds = array<i64: 1, 8, 128>}]} {
    %c0 = arith.constant 0 : index
    %c0_0 = arith.constant 0 : index
    %c0_1 = arith.constant 0 : index
    %0 = vector.load %arg1[%c0, %c0_0, %c0_1] : memref<1x8x128xf32, #tpu.memory_space<vmem>>, vector<1x8x128xf32>
    %c0_2 = arith.constant 0 : index
    %c0_3 = arith.constant 0 : index
    %c0_4 = arith.constant 0 : index
    %1 = vector.load %arg2[%c0_2, %c0_3, %c0_4] : memref<1x8x128xf32, #tpu.memory_space<vmem>>, vector<1x8x128xf32>
    %c0_5 = arith.constant 0 : index
    %c0_6 = arith.constant 0 : index
    %c0_7 = arith.constant 0 : index
    %2 = vector.load %arg5[%c0_5, %c0_6, %c0_7] : memref<1x1x128xf32, #tpu.memory_space<vmem>>, vector<1x1x128xf32>
    %3 = vector.shape_cast %0 : vector<1x8x128xf32> to vector<8x128xf32>
    %c0_8 = arith.constant 0 : index
    %c0_9 = arith.constant 0 : index
    %4 = vector.load %arg6[%c0_8, %c0_9] : memref<128x128xf32, #tpu.memory_space<vmem>>, vector<128x128xf32>
    %cst = arith.constant dense<0.000000e+00> : vector<8x128xf32>
    %5 = tpu.matmul %3, %4, %cst {dimension_numbers = #tpu.dot_dimension_numbers<[1], [0], [0], [1], [0, 0, 1, 1], [], []>, precision = #tpu.contract_precision<fp32>} : vector<8x128xf32>, vector<128x128xf32>, vector<8x128xf32> -> vector<8x128xf32>
    %c0_10 = arith.constant 0 : index
    %c0_11 = arith.constant 0 : index
    %6 = vector.load %arg7[%c0_10, %c0_11] : memref<1x128xf32, #tpu.memory_space<vmem>>, vector<1x128xf32>
    %7 = vector.broadcast %6 : vector<1x128xf32> to vector<8x128xf32>
    %8 = arith.addf %5, %7 : vector<8x128xf32>
    %9 = vector.shape_cast %8 : vector<8x128xf32> to vector<1x8x128xf32>
    %10 = arith.addf %9, %1 : vector<1x8x128xf32>
    %cst_12 = arith.constant 0.707106769 : f32
    %11 = vector.broadcast %cst_12 : f32 to vector<1x8x128xf32>
    %12 = arith.mulf %10, %11 : vector<1x8x128xf32>
    %c0_13 = arith.constant 0 : index
    %c0_14 = arith.constant 0 : index
    %c0_15 = arith.constant 0 : index
    %13 = vector.load %arg3[%c0_13, %c0_14, %c0_15] : memref<1x128x128xf32, #tpu.memory_space<vmem>>, vector<1x128x128xf32>
    "tpu.trace_start"() <{level = 10 : i32, message = "bte,bes->bts"}> : () -> ()
    %cst_16 = arith.constant dense<0.000000e+00> : vector<1x8x128xf32>
    %14 = tpu.matmul %12, %13, %cst_16 {dimension_numbers = #tpu.dot_dimension_numbers<[2], [1], [1], [2], [0, 0, 0, 1, 1, 2], [0], [0]>, precision = #tpu.contract_precision<fp32>} : vector<1x8x128xf32>, vector<1x128x128xf32>, vector<1x8x128xf32> -> vector<1x8x128xf32>
    %cst_17 = arith.constant 5.000000e-01 : f32
    "tpu.trace_stop"() : () -> ()
    %15 = vector.broadcast %cst_17 : f32 to vector<1x1x128xf32>
    %16 = arith.cmpf ogt, %2, %15 : vector<1x1x128xf32>
    %cst_18 = arith.constant 0xFF800000 : f32
    %17 = vector.shape_cast %16 : vector<1x1x128xi1> to vector<1x1x128xi1>
    %18 = vector.broadcast %17 : vector<1x1x128xi1> to vector<1x8x128xi1>
    %19 = vector.broadcast %cst_18 : f32 to vector<1x8x128xf32>
    %20 = arith.select %18, %19, %14 : vector<1x8x128xi1>, vector<1x8x128xf32>
    %cst_19 = arith.constant dense<0xFF800000> : vector<1x8xf32>
    %21 = vector.multi_reduction <maximumf>, %20, %cst_19 [2] : vector<1x8x128xf32> to vector<1x8xf32>
    %22 = vector.shape_cast %21 : vector<1x8xf32> to vector<1x8x1xf32>
    %23 = vector.broadcast %22 : vector<1x8x1xf32> to vector<1x8x128xf32>
    %24 = arith.subf %20, %23 : vector<1x8x128xf32>
    %25 = math.exp %24 : vector<1x8x128xf32>
    %cst_20 = arith.constant dense<0.000000e+00> : vector<1x8xf32>
    %26 = vector.multi_reduction <add>, %25, %cst_20 [2] : vector<1x8x128xf32> to vector<1x8xf32>
    %27 = vector.shape_cast %26 : vector<1x8xf32> to vector<1x8x1xf32>
    %28 = tpu.reciprocal %27 {approx = true} : vector<1x8x1xf32> -> vector<1x8x1xf32>
    %cst_21 = arith.constant dense<0.000000e+00> : vector<1x1xf32>
    %29 = vector.multi_reduction <add>, %2, %cst_21 [2] : vector<1x1x128xf32> to vector<1x1xf32>
    %30 = vector.shape_cast %29 : vector<1x1xf32> to vector<1x1x1xf32>
    %cst_22 = arith.constant 1.280000e+02 : f32
    %31 = vector.broadcast %cst_22 : f32 to vector<1x1x1xf32>
    %32 = arith.subf %31, %30 : vector<1x1x1xf32>
    %33 = math.rsqrt %32 : vector<1x1x1xf32>
    %34 = arith.mulf %32, %33 : vector<1x1x1xf32>
    %35 = vector.broadcast %28 : vector<1x8x1xf32> to vector<1x8x128xf32>
    %36 = arith.mulf %25, %35 : vector<1x8x128xf32>
    %c0_23 = arith.constant 0 : index
    %c0_24 = arith.constant 0 : index
    %c0_25 = arith.constant 0 : index
    %37 = vector.load %arg11[%c0_23, %c0_24, %c0_25] : memref<1x8x128xf32, #tpu.memory_space<vmem>>, vector<1x8x128xf32>
    tpu.vector_store %arg11[%c0_23, %c0_24, %c0_25], %36 {strides = array<i32>} : memref<1x8x128xf32, #tpu.memory_space<vmem>>, vector<1x8x128xf32>,
    %c0_26 = arith.constant 0 : index
    %c0_27 = arith.constant 0 : index
    %c0_28 = arith.constant 0 : index
    %38 = vector.load %arg4[%c0_26, %c0_27, %c0_28] : memref<1x128x128xf32, #tpu.memory_space<vmem>>, vector<1x128x128xf32>
    "tpu.trace_start"() <{level = 10 : i32, message = "bts,bse->bte"}> : () -> ()
    %cst_29 = arith.constant dense<0.000000e+00> : vector<1x8x128xf32>
    %39 = tpu.matmul %36, %38, %cst_29 {dimension_numbers = #tpu.dot_dimension_numbers<[2], [1], [1], [2], [0, 0, 0, 1, 1, 2], [0], [0]>, precision = #tpu.contract_precision<fp32>} : vector<1x8x128xf32>, vector<1x128x128xf32>, vector<1x8x128xf32> -> vector<1x8x128xf32>
    "tpu.trace_stop"() : () -> ()
    %40 = vector.broadcast %34 : vector<1x1x1xf32> to vector<1x8x128xf32>
    %41 = arith.mulf %39, %40 : vector<1x8x128xf32>
    %42 = vector.shape_cast %41 : vector<1x8x128xf32> to vector<8x128xf32>
    %c0_30 = arith.constant 0 : index
    %c0_31 = arith.constant 0 : index
    %43 = vector.load %arg8[%c0_30, %c0_31] : memref<128x128xf32, #tpu.memory_space<vmem>>, vector<128x128xf32>
    %cst_32 = arith.constant dense<0.000000e+00> : vector<8x128xf32>
    %44 = tpu.matmul %42, %43, %cst_32 {dimension_numbers = #tpu.dot_dimension_numbers<[1], [0], [0], [1], [0, 0, 1, 1], [], []>, precision = #tpu.contract_precision<fp32>} : vector<8x128xf32>, vector<128x128xf32>, vector<8x128xf32> -> vector<8x128xf32>
    %c0_33 = arith.constant 0 : index
    %c0_34 = arith.constant 0 : index
    %45 = vector.load %arg9[%c0_33, %c0_34] : memref<1x128xf32, #tpu.memory_space<vmem>>, vector<1x128xf32>
    %46 = vector.broadcast %45 : vector<1x128xf32> to vector<8x128xf32>
    %47 = arith.addf %44, %46 : vector<8x128xf32>
    %48 = vector.shape_cast %47 : vector<8x128xf32> to vector<1x8x128xf32>
    %49 = arith.addf %48, %0 : vector<1x8x128xf32>
    %cst_35 = arith.constant 0.707106769 : f32
    %50 = vector.broadcast %cst_35 : f32 to vector<1x8x128xf32>
    %51 = arith.mulf %49, %50 : vector<1x8x128xf32>
    %c0_36 = arith.constant 0 : index
    %c0_37 = arith.constant 0 : index
    %c0_38 = arith.constant 0 : index
    %52 = vector.load %arg10[%c0_36, %c0_37, %c0_38] : memref<1x8x128xf32, #tpu.memory_space<vmem>>, vector<1x8x128xf32>
    tpu.vector_store %arg10[%c0_36, %c0_37, %c0_38], %51 {strides = array<i32>} : memref<1x8x128xf32, #tpu.memory_space<vmem>>, vector<1x8x128xf32>,
    return
  }
  func.func @transform_0(%arg0: i32) -> (i32, i32, i32) {
    %c0_i32 = arith.constant 0 : i32
    %c0_i32_0 = arith.constant 0 : i32
    %c0_i32_1 = arith.constant 0 : i32
    return %arg0, %c0_i32, %c0_i32_0 : i32, i32, i32
  }
  func.func @transform_1(%arg0: i32) -> (i32, i32, i32) {
    %c0_i32 = arith.constant 0 : i32
    %c0_i32_0 = arith.constant 0 : i32
    %c0_i32_1 = arith.constant 0 : i32
    return %arg0, %c0_i32, %c0_i32_0 : i32, i32, i32
  }
  func.func @transform_2(%arg0: i32) -> (i32, i32, i32) {
    %c0_i32 = arith.constant 0 : i32
    %c0_i32_0 = arith.constant 0 : i32
    %c0_i32_1 = arith.constant 0 : i32
    return %arg0, %c0_i32, %c0_i32_0 : i32, i32, i32
  }
  func.func @transform_3(%arg0: i32) -> (i32, i32, i32) {
    %c0_i32 = arith.constant 0 : i32
    %c0_i32_0 = arith.constant 0 : i32
    %c0_i32_1 = arith.constant 0 : i32
    return %arg0, %c0_i32, %c0_i32_0 : i32, i32, i32
  }
  func.func @transform_4(%arg0: i32) -> (i32, i32, i32) {
    %c0_i32 = arith.constant 0 : i32
    %c0_i32_0 = arith.constant 0 : i32
    %c0_i32_1 = arith.constant 0 : i32
    return %arg0, %c0_i32, %c0_i32_0 : i32, i32, i32
  }
  func.func @transform_5(%arg0: i32) -> (i32, i32) {
    %c0_i32 = arith.constant 0 : i32
    %c0_i32_0 = arith.constant 0 : i32
    %c0_i32_1 = arith.constant 0 : i32
    return %c0_i32, %c0_i32_0 : i32, i32
  }
  func.func @transform_6(%arg0: i32) -> (i32, i32) {
    %c0_i32 = arith.constant 0 : i32
    %c0_i32_0 = arith.constant 0 : i32
    %c0_i32_1 = arith.constant 0 : i32
    return %c0_i32, %c0_i32_0 : i32, i32
  }
  func.func @transform_7(%arg0: i32) -> (i32, i32) {
    %c0_i32 = arith.constant 0 : i32
    %c0_i32_0 = arith.constant 0 : i32
    %c0_i32_1 = arith.constant 0 : i32
    return %c0_i32, %c0_i32_0 : i32, i32
  }
  func.func @transform_8(%arg0: i32) -> (i32, i32) {
    %c0_i32 = arith.constant 0 : i32
    %c0_i32_0 = arith.constant 0 : i32
    %c0_i32_1 = arith.constant 0 : i32
    return %c0_i32, %c0_i32_0 : i32, i32
  }
  func.func @transform_9(%arg0: i32) -> (i32, i32, i32) {
    %c0_i32 = arith.constant 0 : i32
    %c0_i32_0 = arith.constant 0 : i32
    %c0_i32_1 = arith.constant 0 : i32
    return %arg0, %c0_i32, %c0_i32_0 : i32, i32, i32
  }
  func.func @transform_10(%arg0: i32) -> (i32, i32, i32) {
    %c0_i32 = arith.constant 0 : i32
    %c0_i32_0 = arith.constant 0 : i32
    %c0_i32_1 = arith.constant 0 : i32
    return %arg0, %c0_i32, %c0_i32_0 : i32, i32, i32
  }
}

</mosaic_0001>

<bundles_post_ra>
// kernel: tpu_custom_call.1
= control target key start
LH: loop header
LB: loop body
LE: loop exit
PB: predicated region body
PF: predicated region fallthrough
CT: control target
= control target key end

     0   :  { %s7019_s0 = inlined_call_operand.hbm [shape: f32[2,8,128], index: 0, kind: input, shape index: {}]   ;;  %s7020_s1 = inlined_call_operand.hbm [shape: f32[2,8,128], index: 1, kind: input, shape index: {}]   ;;  %s7021_s2 = inlined_call_operand.hbm [shape: f32[2,128,128], index: 2, kind: input, shape index: {}]   ;;  %s7022_s3 = inlined_call_operand.hbm [shape: f32[2,128,128], index: 3, kind: input, shape index: {}]   ;;  %s7023_s4 = inlined_call_operand.vmem [shape: f32[2,1,128], index: 4, kind: input, shape index: {}]   ;;  %s7024_s5 = inlined_call_operand.hbm [shape: f32[128,128], index: 5, kind: input, shape index: {}]   ;;  %s7025_s6 = inlined_call_operand.vmem [shape: f32[1,128], index: 6, kind: input, shape index: {}]   ;;  %s7026_s7 = inlined_call_operand.hbm [shape: f32[128,128], index: 7, kind: input, shape index: {}]   ;;  %s7027_s8 = inlined_call_operand.vmem [shape: f32[1,128], index: 8, kind: input, shape index: {}]   ;;  %s7028_s9 = inlined_call_operand.hbm [shape: f32[2,8,128], index: 9, kind: output, shape index: {0}]   ;;  %s7029_s10 = inlined_call_operand.hbm [shape: f32[2,8,128], index: 10, kind: output, shape index: {1}]  }
   0x1   :  { %7066 = sst [smem:[#allocation29_spill]] %s7020_s1 }
   0x2   :  { %7067 = sst [smem:[#allocation30_spill]] %s7024_s5 }
   0x3   :  { %7068 = sst [smem:[#allocation31_spill]] %s7026_s7 }
   0x4   :  { %7069 = sst [smem:[#allocation32_spill]] %s7027_s8 }
   0x5   :  { %7070 = sst [smem:[#allocation33_spill]] %s7028_s9 }
   0x6   :  { %7071 = sst [smem:[#allocation34_spill]] %s7029_s10 }
   0x7   :  { %16 = vsyncpa [#allocation3], 0 }
   0x8   :  { %18 = vsyncpa [#allocation3 + $0x1], 0 }
   0x9   :  { %19 = vsyncpa [#allocation6], 0 }
   0xa   :  { %21 = vsyncpa [#allocation6 + $0x1], 0 }
   0xb   :  { %22 = vsyncpa [#allocation9], 0 }
   0xc   :  { %24 = vsyncpa [#allocation9 + $0x1], 0 }
   0xd   :  { %25 = vsyncpa [#allocation12], 0 }
   0xe   :  { %26 = vsyncpa [#allocation4], 0 }
   0xf   :  { %28 = vsyncpa [#allocation4 + $0x1], 0 }
  0x10   :  { %29 = vsyncpa [#allocation15], 0 }
  0x11   :  { %31 = vsyncpa [#allocation15 + $0x1], 0  ;;  %s5176_s13 = smov 0   ;;  %s5178_s14 = smov 0  }
  0x12   :  { %s5180_s15 = smov 0   ;;  %s5182_s16 = smov 0  }
  0x13 LB: > { %7072 = sst [smem:[#allocation23_spill]] %s5094_s13  ;;  %s5197_s17 = sadd.s32 4294967295, %s5106_s16   ;;  %s5106_s16 = sphi %s5182_s16, %s7125_s16   ;;  %s5102_s15 = sphi %s5180_s15, %s7127_s15   ;;  %s5098_s14 = sphi %s5178_s14, %s7129_s14   ;;  %s5094_s13 = sphi %s5176_s13, %s7128_s13  }
  0x14   : > { %7073 = sst [smem:[#allocation24_spill]] %s5102_s15  ;;  %s3451_s18 = sadd.s32 4294967294, %s5106_s16  }
  0x15   : > { %p57_p0 = scmp.ne.s32.totalorder %s5098_s14, %s5094_s13  ;;  %p7041_p1 = scmp.eq.s32.totalorder %s5197_s17, 0 }
  0x16   : > { %p269_p2 = scmp.eq.s32.totalorder %s5197_s17, 1  ;;  %p275_p3 = scmp.eq.s32.totalorder %s3451_s18, 1 }
  0x17   : > { %p5206_p4 = por %p7041_p1, %p57_p0  ;;  %p3452_p5 = scmp.ge.s32.totalorder %s5106_s16, 1 }
  0x18   : > { %p5211_p6 = por %p275_p3, %p57_p0  ;;  %p308_p7 = scmp.lt.s32.totalorder %s5106_s16, 3 }
  0x19   : > { %s7074_s19 = scalar_select %p5206_p4, 1, 0 }
  0x1a   : > { %s7075_s20 = scalar_select %p5211_p6, 1, 0 }
  0x1b   : > { %p5216_p8 = pnand %p3452_p5, %p308_p7  ;;  %s5108_s22 = smov [#allocation10]  }
  0x1c   : > { %7076 = sst [smem:[#allocation25_spill]] %s7075_s20  ;;  %s320_s23 = sshll.u32 %s5108_s22, 4  ;;  %s321_s23 = int_to_ptr.vmem [resolvable:$true] %s320_s23 }
  0x1d   : > { %s7077_s21 = scalar_select %p5216_p8, 1, 0 }
  0x1e   : > { %p4753_p9 = pneg %p5216_p8  ;;  %s5230_s25 = sadd.s32 1, %s5106_s16  }
  0x1f   : > { %7079 = sst [smem:[#allocation26_spill]] %s5230_s25  ;;  %s44_s26 = sadd.s32 1, %s5102_s15 }
  0x20   : > { %p5225_p11 = pnand %p4753_p9, %p7041_p1  ;;  %s41_s27 = ssub.s32 %s5106_s16, %s5230_s25 }
  0x21   : > { %s4843_s28 = scalar_lea.vmem %s321_s23, 2048  ;;  %p4851_p5 = scmp.lt.s32.totalorder %s321_s23, %s321_s23 }
  0x22   : > { %s7078_s24 = scalar_select %p5225_p11, 1, 0 }
  0x23   : > { %p7042_p12 = pneg %p5225_p11  ;;  %p4844_p13 = scmp.ne.s32.totalorder %s321_s23, %s4843_s28 }
  0x24   : > { %p4852_p7 = scmp.lt.s32.totalorder %s4843_s28, %s4843_s28 }
  0x25   : > { %p4846_p0 = pnand %p4844_p13, %p7042_p12 }
  0x26   : > { %p4853_p9 = por %p4852_p7, %p4851_p5 }
  0x27   : > { %p4847_p3 = pneg %p4846_p0 }
  0x29   : > { %p4854_p10 = pnand %p4853_p9, %p4847_p3 }
  0x2b   : > { %4857 = shalt.err (!%p4854_p10)
}
  0x2c   : > { %s7030_s29 = smov 128   ;;  %s7032_s30 = smov 8  }
  0x2d   : > { %s7080_s5 = sld [smem:[#allocation30_spill]]  ;;  %p42_p10 = scmp.eq.s32.totalorder %s41_s27, 0 }
  0x2e   : > { %p51_p13 = scmp.ne.s32.totalorder %s5102_s15, %s5098_s14  ;;  %p52_p0 = scmp.eq.s32.totalorder %s5106_s16, 0 }
  0x2f   : > { %p4782_p3 = scmp.lt.s32.totalorder %s5106_s16, 2  ;;  %s5262_s28 = sand.u32 1, %s5102_s15  }
  0x30   : > { %s5253_s18 = scalar_select %p42_p10, %s5102_s15, %s44_s26  }
  0x31   : > { %p53_p5 = por %p52_p0, %p51_p13  ;;  %p5257_p7 = por %p269_p2, %p51_p13 }
  0x32   : > { %7081 = sst [smem:[#allocation27_spill]] %s5253_s18  ;;  %s7040_s11 = sshll.u32 %s5106_s16, 7 }
  0x33   : > { %4756 = dma.hbm_to_vmem [thread:$0]  (!%p5225_p11), %s7080_s5, 2048, %s321_s23, [#allocation9], %s7030_s29, %s7030_s29, %s7032_s30  }
  0x34   : > { %s7082_s22 = scalar_select %p5257_p7, 1, 0 }
  0x35   : > { %s7039_s23 = sshll.u32 %s5262_s28, 3  ;;  %p5266_p9 = pnand %p4782_p3, %p53_p5 }
  0x36   : > { %7083 = sst [smem:[#allocation28_spill]] %s7082_s22  ;;  %s7043_s26 = sand.u32 1, %s5106_s16  }
  0x37   : > { %s7085_s1 = sld [smem:[#allocation29_spill]]  ;;  %s375_s5 = scalar_lea.vmem [#allocation5], %s7039_s23 }
  0x38   : > { %s382_s18 = sshll.u32 %s375_s5, 4  ;;  %s5283_s25 = scalar_lea.sflag [#allocation6], %s7043_s26  ;;  %s383_s18 = int_to_ptr.vmem [resolvable:$true] %s382_s18 }
  0x39   : > { %p5289_p10 = pneg %p5266_p9 }
  0x3d   : > { %s5276_s30 = scalar_lea.hbm %s7085_s1, %s7040_s11  ;;  %s4863_s5 = scalar_lea.hbm %s7085_s1, 256 }
  0x3e   : > { %s4858_s20 = scalar_lea.hbm %s5276_s30, 128  ;;  %p4864_p3 = scmp.lt.s32.totalorder %s5276_s30, %s7085_s1 }
  0x3f   : > { %p4859_p2 = scmp.ne.s32.totalorder %s5276_s30, %s4858_s20  ;;  %p4865_p5 = scmp.lt.s32.totalorder %s4863_s5, %s4858_s20 }
  0x41   : > { %p4861_p13 = pnand %p5289_p10, %p4859_p2  ;;  %p4866_p1 = por %p4865_p5, %p4864_p3 }
  0x43   : > { %p4862_p0 = pneg %p4861_p13 }
  0x45   : > { %p4867_p12 = pnand %p4866_p1, %p4862_p0 }
  0x47   : > { %4870 = shalt.err (!%p4867_p12)
}
  0x48   : > { %s4871_s26 = scalar_lea.vmem %s383_s18, 128  ;;  %s5111_s15 = smov [#allocation5]  }
  0x49   : > { %p4872_p6 = scmp.ne.s32.totalorder %s383_s18, %s4871_s26  ;;  %s4876_s9 = sshll.u32 %s5111_s15, 4  ;;  %s4877_s9 = int_to_ptr.vmem [resolvable:$false] %s4876_s9 }
  0x4a   : > { %s4878_s8 = scalar_lea.vmem %s4877_s9, 256  ;;  %p4879_p2 = scmp.lt.s32.totalorder %s383_s18, %s4877_s9 }
  0x4b   : > { %p4874_p7 = pnand %p4872_p6, %p5289_p10  ;;  %p4880_p13 = scmp.lt.s32.totalorder %s4878_s8, %s4871_s26 }
  0x4d   : > { %p4875_p4 = pneg %p4874_p7  ;;  %p4881_p8 = por %p4880_p13, %p4879_p2 }
  0x4f   : > { %p4882_p11 = pnand %p4881_p8, %p4875_p4 }
  0x51   : > { %4885 = shalt.err (!%p4882_p11)
}
  0x52   : > { %4766 = dma.hbm_to_vmem [thread:$0]  (!%p5266_p9), %s5276_s30, 128, %s383_s18, %s5283_s25  }
  0x53   : > { %s7087_s20 = sshll.u32 %s5262_s28, 7  ;;  %s5112_s8 = smov [#allocation11]  }
  0x54   : > { %s393_s11 = scalar_lea.vmem [#allocation7], %s7087_s20  ;;  %s7088_s15 = smov %s7087_s20 }
  0x55   : > { %s400_s23 = sshll.u32 %s393_s11, 4  ;;  %s414_s29 = scalar_lea.vmem [#allocation8], %s7088_s15  ;;  %s5310_s23 = int_to_ptr.vmem [resolvable:$true] %s400_s23 }
  0x56   : > { %s421_s9 = sshll.u32 %s414_s29, 4  ;;  %s336_s26 = sshll.u32 %s5112_s8, 4  ;;  %s5314_s9 = int_to_ptr.vmem [resolvable:$true] %s421_s9  ;;  %s337_s26 = int_to_ptr.vmem [resolvable:$true] %s336_s26 }
  0x57   : > { %s4897_s12 = scalar_lea.vmem %s337_s26, 2048  ;;  %p7089_p4 = scmp.ne.s32.totalorder %s7078_s24, 0 }
  0x58   : > { %p4898_p1 = scmp.ne.s32.totalorder %s337_s26, %s4897_s12  ;;  %p4905_p12 = scmp.lt.s32.totalorder %s337_s26, %s337_s26 }
  0x59   : > { %p7090_p6 = pneg %p7089_p4  ;;  %p4906_p7 = scmp.lt.s32.totalorder %s4897_s12, %s4897_s12 }
  0x5b   : > { %p4900_p8 = pnand %p4898_p1, %p7090_p6  ;;  %p4907_p0 = por %p4906_p7, %p4905_p12 }
  0x5d   : > { %p4901_p11 = pneg %p4900_p8 }
  0x5f   : > { %p4908_p3 = pnand %p4907_p0, %p4901_p11 }
  0x61   : > { %4911 = shalt.err (!%p4908_p3)
}
  0x62   : > { %s7091_s30 = smov 8   ;;  %s7092_s18 = smov 128  }
  0x63   : > { %s7093_s7 = sld [smem:[#allocation31_spill]]  ;;  %s7094_s11 = sshll.u32 %s5106_s16, 7 }
  0x64   : > { %s5332_s8 = scalar_lea.hbm %s7019_s0, %s7094_s11  ;;  %s7095_s12 = sshll.u32 %s5262_s28, 3 }
  0x65   : > { %s357_s24 = scalar_lea.vmem [#allocation2], %s7095_s12  ;;  %s3483_s5 = sshll.u32 %s5106_s16, 11 }
  0x66   : > { %s364_s1 = sshll.u32 %s357_s24, 4  ;;  %s354_s20 = scalar_lea.sflag [#allocation3], %s5262_s28  ;;  %s365_s1 = int_to_ptr.vmem [resolvable:$true] %s364_s1 }
  0x67   : > { %s4912_s10 = scalar_lea.hbm %s5332_s8, 128  ;;  %s4917_s15 = scalar_lea.hbm %s7019_s0, 256 }
  0x68   : > { %p4913_p5 = scmp.ne.s32.totalorder %s5332_s8, %s4912_s10  ;;  %p4918_p1 = scmp.lt.s32.totalorder %s5332_s8, %s7019_s0 }
  0x69   : > { %4759 = dma.hbm_to_vmem [thread:$0]  (!%p7089_p4), %s7093_s7, 2048, %s337_s26, [#allocation12], %s7092_s18, %s7092_s18, %s7091_s30  }
  0x6a   : > { %p4915_p2 = pnand %p4913_p5, %p5289_p10  ;;  %p4919_p4 = scmp.lt.s32.totalorder %s4917_s15, %s4912_s10 }
  0x6c   : > { %p4916_p13 = pneg %p4915_p2  ;;  %p4920_p6 = por %p4919_p4, %p4918_p1 }
  0x6e   : > { %p4921_p8 = pnand %p4920_p6, %p4916_p13 }
  0x70   : > { %4924 = shalt.err (!%p4921_p8)
}
  0x71   : > { %s4925_s12 = scalar_lea.vmem %s365_s1, 128  ;;  %s5113_s28 = smov [#allocation2]  }
  0x72   : > { %p4926_p11 = scmp.ne.s32.totalorder %s365_s1, %s4925_s12  ;;  %s4930_s24 = sshll.u32 %s5113_s28, 4  ;;  %s4931_s24 = int_to_ptr.vmem [resolvable:$false] %s4930_s24 }
  0x73   : > { %s4932_s22 = scalar_lea.vmem %s4931_s24, 256  ;;  %p4933_p0 = scmp.lt.s32.totalorder %s365_s1, %s4931_s24 }
  0x74   : > { %p4928_p12 = pnand %p4926_p11, %p5289_p10  ;;  %p4934_p3 = scmp.lt.s32.totalorder %s4932_s22, %s4925_s12 }
  0x76   : > { %p4929_p7 = pneg %p4928_p12  ;;  %p4935_p5 = por %p4934_p3, %p4933_p0 }
  0x78   : > { %p4936_p2 = pnand %p4935_p5, %p4929_p7 }
  0x7a   : > { %4939 = shalt.err (!%p4936_p2)
}
  0x7b   : > { %4763 = dma.hbm_to_vmem [thread:$0]  (!%p5266_p9), %s5332_s8, 128, %s365_s1, %s354_s20  }
  0x7c   : > { %s5357_s26 = scalar_lea.hbm %s7021_s2, %s3483_s5  ;;  %s5362_s22 = scalar_lea.hbm %s7022_s3, %s3483_s5 }
  0x7d   : > { %s4940_s29 = scalar_lea.hbm %s5357_s26, 2048  ;;  %s4945_s8 = scalar_lea.hbm %s7021_s2, 4096 }
  0x7e   : > { %p4941_p13 = scmp.ne.s32.totalorder %s5357_s26, %s4940_s29  ;;  %p4946_p6 = scmp.lt.s32.totalorder %s5357_s26, %s7021_s2 }
  0x7f   : > { %p4947_p8 = scmp.lt.s32.totalorder %s4945_s8, %s4940_s29 }
  0x80   : > { %p4943_p1 = pnand %p4941_p13, %p5289_p10 }
  0x81   : > { %p4948_p11 = por %p4947_p8, %p4946_p6 }
  0x82   : > { %p4944_p4 = pneg %p4943_p1 }
  0x84   : > { %p4949_p12 = pnand %p4948_p11, %p4944_p4 }
  0x86   : > { %4952 = shalt.err (!%p4949_p12)
}
  0x87   : > { %s4953_s5 = scalar_lea.vmem %s5310_s23, 2048  ;;  %s5114_s24 = smov [#allocation7]  }
  0x88   : > { %p4954_p7 = scmp.ne.s32.totalorder %s5310_s23, %s4953_s5  ;;  %s4958_s7 = sshll.u32 %s5114_s24, 4  ;;  %s4959_s7 = int_to_ptr.vmem [resolvable:$false] %s4958_s7 }
  0x89   : > { %s4960_s10 = scalar_lea.vmem %s4959_s7, 4096  ;;  %p4961_p5 = scmp.lt.s32.totalorder %s5310_s23, %s4959_s7 }
  0x8a   : > { %p4956_p0 = pnand %p4954_p7, %p5289_p10  ;;  %p4962_p2 = scmp.lt.s32.totalorder %s4960_s10, %s4953_s5 }
  0x8c   : > { %p4957_p3 = pneg %p4956_p0  ;;  %p4963_p13 = por %p4962_p2, %p4961_p5 }
  0x8e   : > { %p4964_p1 = pnand %p4963_p13, %p4957_p3 }
  0x90   : > { %4967 = shalt.err (!%p4964_p1)
}
  0x91   : > { %4769 = dma.hbm_to_vmem [thread:$0]  (!%p5266_p9), %s5357_s26, 2048, %s5310_s23, %s5283_s25, %s7092_s18, %s7092_s18, %s7091_s30  }
  0x92   : > { %s7096_s15 = sand.u32 1, %s5106_s16   ;;  %s4968_s29 = scalar_lea.hbm %s5362_s22, 2048 }
  0x93   : > { %s411_s11 = scalar_lea.sflag [#allocation9], %s7096_s15  ;;  %p4969_p4 = scmp.ne.s32.totalorder %s5362_s22, %s4968_s29 }
  0x94   : > { %s4973_s8 = scalar_lea.hbm %s7022_s3, 4096  ;;  %p4974_p11 = scmp.lt.s32.totalorder %s5362_s22, %s7022_s3 }
  0x95   : > { %p4971_p6 = pnand %p4969_p4, %p5289_p10  ;;  %p4975_p12 = scmp.lt.s32.totalorder %s4973_s8, %s4968_s29 }
  0x97   : > { %p4972_p8 = pneg %p4971_p6  ;;  %p4976_p7 = por %p4975_p12, %p4974_p11 }
  0x99   : > { %p4977_p0 = pnand %p4976_p7, %p4972_p8 }
  0x9b   : > { %4980 = shalt.err (!%p4977_p0)
}
  0x9c   : > { %s4981_s25 = scalar_lea.vmem %s5314_s9, 2048  ;;  %s5115_s23 = smov [#allocation8]  }
  0x9d   : > { %p4982_p3 = scmp.ne.s32.totalorder %s5314_s9, %s4981_s25  ;;  %s4986_s26 = sshll.u32 %s5115_s23, 4  ;;  %s4987_s26 = int_to_ptr.vmem [resolvable:$false] %s4986_s26 }
  0x9e   : > { %s4988_s5 = scalar_lea.vmem %s4987_s26, 4096  ;;  %p4989_p13 = scmp.lt.s32.totalorder %s5314_s9, %s4987_s26 }
  0x9f   : > { %p4984_p5 = pnand %p4982_p3, %p5289_p10  ;;  %p4990_p1 = scmp.lt.s32.totalorder %s4988_s5, %s4981_s25 }
  0xa1   : > { %p4985_p2 = pneg %p4984_p5  ;;  %p4991_p4 = por %p4990_p1, %p4989_p13 }
  0xa3   : > { %p4992_p6 = pnand %p4991_p4, %p4985_p2 }
  0xa5   : > { %4995 = shalt.err (!%p4992_p6)
}
  0xa6   : > { %4772 = dma.hbm_to_vmem [thread:$0]  (!%p5266_p9), %s5362_s22, 2048, %s5314_s9, %s411_s11, %s7092_s18, %s7092_s18, %s7091_s30  }
  0xa7   : > { %p7097_p10 = scmp.ne.s32.totalorder %s7077_s21, 0 }
  0xa8   : > { %s5416_s13 = sand.u32 (!%p7097_p10), 1, %s5098_s14   ;;  %p7098_p8 = scmp.ne.s32.totalorder (!%p7097_p10), %s7074_s19, 0 }
  0xa9   : > { %439 = sbr.rel (%p7097_p10) target bundleno = 1645 (0x66d), region = 56  ;;  %s5419_s24 = sshll.u32 (!%p7097_p10), %s5416_s13, 3 }
  0xaa   : > { %s442_s7 = scalar_lea.sflag (!%p7097_p10), [#allocation3], %s5416_s13  ;;  %s445_s27 = scalar_lea.vmem (!%p7097_p10), [#allocation2], %s5419_s24 }
  0xae   : > { %5065 = dma.done.wait (%p7098_p8), %s442_s7, 128  }
  0xaf   : > { %5067 = vsyncadd (%p7098_p8), %s442_s7, 4294967168  ;;  %s450_s21 = sand.u32 1, %s5197_s17   ;;  %s454_s30 = scalar_lea.vmem [#allocation5], %s5419_s24 }
  0xb0   : > { %s451_s9 = scalar_lea.sflag [#allocation6], %s450_s21 }
  0xb1   : > { %5069 = dma.done.wait (%p7098_p8), %s451_s9, 2176  }
  0xb2   : > { %5071 = vsyncadd (%p7098_p8), %s451_s9, 4294965120  ;;  %s3469_s18 = sshll.u32 %s5416_s13, 7  ;;  %s469_s10 = scalar_lea.sflag [#allocation9], %s450_s21 }
  0xb3   : > { %s5434_s22 = scalar_lea.vmem [#allocation7], %s3469_s18  ;;  %s5436_s15 = scalar_lea.vmem [#allocation8], %s3469_s18 }
  0xb4   : > { %5073 = dma.done.wait (%p7098_p8), %s469_s10, 2048  }
  0xb5   : > { %5075 = vsyncadd (%p7098_p8), %s469_s10, 4294965248  ;;  %p7099_p9 = scmp.eq.s32.totalorder %s5197_s17, 0 }
  0xb7   : > { %5077 = dma.done.wait (%p7099_p9), [#allocation9], 2048   ;;  %p7100_p11 = pmov %p7099_p9 }
  0xb8   : > { %p7101_p12 = pmov %p7099_p9 }
  0xb9   : > { %5079 = vsyncadd (%p7100_p11), [#allocation9], 4294965248 }
  0xba   : > { %5081 = dma.done.wait (%p7101_p12), [#allocation12], 2048   ;;  %p7102_p7 = pmov %p7099_p9 }
  0xbb   : > { %v5116_v0 = vmov 0.0   ;;  %vm5117_vm0 = vmmov 0   ;;  %v561_v1 = vld [vmem:[#allocation10 + $0x78] sm:$0xff]  ;;  %v560_v2 = vld [vmem:[#allocation10 + $0x70] sm:$0xff]  ;;  %v559_v3 = vld [vmem:[#allocation10 + $0x68] sm:$0xff]  ;;  %p540_p0 = scmp.lt.s32.totalorder %s5197_s17, 1 }
  0xbc   : > { %5083 = vsyncadd (%p7102_p7), [#allocation12], 4294965248  ;;  %3893 = vmatprep.subr.mxu0 %v5116_v0  ;;  %3928 = vmatprep.subr.mxu1 %v5116_v0  ;;  %v5456_v4 = vand.u32 4294901760, %v561_v1  ;;  %v5458_v5 = vand.u32 4294901760, %v560_v2  ;;  %v5460_v6 = vand.u32 4294901760, %v559_v3  ;;  %v558_v7 = vld [vmem:[#allocation10 + $0x60] sm:$0xff] }
  0xbd   : > { %3925 = vmatprep.mubr.msk.f32.mxu0 %vm5117_vm0, %v5116_v0  ;;  %3960 = vmatprep.mubr.msk.f32.mxu1 %vm5117_vm0, %v5116_v0  ;;  %v557_v8 = vld [vmem:[#allocation10 + $0x58] sm:$0xff]  ;;  %v556_v9 = vld [vmem:[#allocation10 + $0x50] sm:$0xff]  ;;  %v5462_v10 = vand.u32 4294901760, %v558_v7  ;;  %v555_v13 = vld [vmem:[#allocation10 + $0x48] sm:$0xff]  ;;  %s541_s29 = scalar_select %p540_p0, %s5197_s17, 1  ;;  %vm1885_vm3 = vcmask 1040384  }
  0xbe   : > { %v5464_v11 = vand.u32 4294901760, %v557_v8  ;;  %v5466_v12 = vand.u32 4294901760, %v556_v9  ;;  %v554_v14 = vld [vmem:[#allocation10 + $0x40] sm:$0xff]  ;;  %3894 = vmatpush3.msra.mxu0 %v5456_v4  ;;  %v5470_v15 = vsub.f32 %v561_v1, %v5456_v4  ;;  %v5473_v16 = vsub.f32 %v560_v2, %v5458_v5  ;;  %v553_v19 = vld [vmem:[#allocation10 + $0x38] sm:$0xff]  ;;  %v552_v26 = vld [vmem:[#allocation10 + $0x30] sm:$0xff]  ;;  %s539_s20 = scalar_lea.vmem [#allocation14], %s5419_s24 }
  0xbf   : > { %v5475_v17 = vand.u32 4294901760, %v555_v13  ;;  %v5478_v18 = vsub.f32 %v559_v3, %v5460_v6  ;;  %3895 = vmatprep.subr.mxu0 %v5116_v0  ;;  %v5482_v20 = vsub.f32 %v558_v7, %v5462_v10  ;;  %v5491_v25 = vand.u32 4294901760, %v554_v14  ;;  %v551_v36 = vld [vmem:[#allocation10 + $0x28] sm:$0xff]  ;;  %v550_v41 = vld [vmem:[#allocation10 + $0x20] sm:$0xff]  ;;  %v549_v49 = vld [vmem:[#allocation10 + $0x18] sm:$0xff]  ;;  %s542_s8 = scalar_lea.vmem %s7023_s4, %s541_s29  ;;  %s7113_s28 = sld [smem:[#allocation28_spill]] }
  0xc0   : > { %v5485_v21 = vsub.f32 %v557_v8, %v5464_v11  ;;  %3896 = vmatpush3.msra.mxu0 %v5458_v5  ;;  %v663_v22 = vand.u32 4294901760, %v5470_v15  ;;  %v670_v23 = vand.u32 4294901760, %v5473_v16  ;;  %v5495_v28 = vand.u32 4294901760, %v553_v19  ;;  %v543_v50 = vld [vmem:[%s445_s27] sm:$0xff]  ;;  %v548_v54 = vld [vmem:[#allocation10 + $0x10] sm:$0xff]  ;;  %s3479_s25 = sshll.u32 %s5197_s17, 7 }
  0xc1   : > { %v677_v24 = vand.u32 4294901760, %v5478_v18  ;;  %3897 = vmatprep.subr.mxu0 %v5116_v0  ;;  %v684_v27 = vand.u32 4294901760, %v5482_v20  ;;  %v5499_v30 = vsub.f32 %v556_v9, %v5466_v12  ;;  %v5512_v34 = vsub.f32 %v555_v13, %v5475_v17  ;;  %v547_v60 = vld [vmem:[#allocation10 + $0x8] sm:$0xff]  ;;  %v546_v7 = vld [vmem:[#allocation10] sm:$0xff]  ;;  %s7117_s5 = sld [smem:[#allocation34_spill]]  ;;  %s3255_s21 = sshll.u32 %s539_s20, 4  ;;  %s3256_s21 = int_to_ptr.vmem [resolvable:$true] %s3255_s21 }
  0xc2   : > { %v691_v29 = vand.u32 4294901760, %v5485_v21  ;;  %3898 = vmatpush3.msra.mxu0 %v5460_v6  ;;  %v664_v31 = vsub.f32 %v5470_v15, %v663_v22  ;;  %v671_v32 = vsub.f32 %v5473_v16, %v670_v23  ;;  %v5515_v35 = vand.u32 4294901760, %v552_v26  ;;  %s3229_s9 = scalar_lea.sflag [#allocation15], %s5416_s13  ;;  %s5119_s18 = smov [#allocation14]  }
  0xc3   : > { %v678_v33 = vsub.f32 %v5478_v18, %v677_v24  ;;  %3899 = vmatprep.subr.mxu0 %v5116_v0  ;;  %v685_v39 = vsub.f32 %v5482_v20, %v684_v27  ;;  %v698_v40 = vand.u32 4294901760, %v5499_v30  ;;  %v5527_v43 = vsub.f32 %v554_v14, %v5491_v25 }
  0xc4   : > { %3900 = vmatpush3.msra.mxu0 %v5462_v10  ;;  %v665_v37 = vand.u32 4294901760, %v664_v31  ;;  %v672_v38 = vand.u32 4294901760, %v671_v32  ;;  %v692_v42 = vsub.f32 %v5485_v21, %v691_v29  ;;  %v5530_v45 = vand.u32 4294901760, %v551_v36 }
  0xc5   : > { %3901 = vmatprep.subr.mxu0 %v5116_v0  ;;  %v679_v44 = vand.u32 4294901760, %v678_v33  ;;  %v705_v46 = vand.u32 4294901760, %v5512_v34  ;;  %v5534_v47 = vsub.f32 %v553_v19, %v5495_v28  ;;  %v5538_v48 = vand.u32 4294901760, %v550_v41  ;;  %p7118_p5 = scmp.ne.s32.totalorder %s7113_s28, 0 }
  0xc6   : > { %3902 = vmatpush3.msra.mxu0 %v5464_v11  ;;  %3929 = vmatpush3.msra.mxu1 %v665_v37  ;;  %v686_v51 = vand.u32 4294901760, %v685_v39  ;;  %v699_v52 = vsub.f32 %v5499_v30, %v698_v40  ;;  %v712_v53 = vand.u32 4294901760, %v5527_v43  ;;  %v5548_v55 = vsub.f32 %v552_v26, %v5515_v35 }
  0xc7   : > { %3903 = vmatprep.subr.mxu0 %v5116_v0  ;;  %3930 = vmatprep.subr.mxu1 %v5116_v0  ;;  %v693_v56 = vand.u32 4294901760, %v692_v42  ;;  %v719_v57 = vand.u32 4294901760, %v5534_v47  ;;  %v706_v58 = vsub.f32 %v5512_v34, %v705_v46  ;;  %v5557_v59 = vand.u32 4294901760, %v549_v49  ;;  %s3253_s7 = scalar_lea.hbm %s7117_s5, %s3479_s25 }
  0xc8   : > { %3904 = vmatpush3.msra.mxu0 %v5466_v12  ;;  %3931 = vmatpush3.msra.mxu1 %v672_v38  ;;  %v5560_v61 = vsub.f32 %v551_v36, %v5530_v45  ;;  %v5562_v62 = vand.u32 4294901760, %v543_v50  ;;  %v5566_v63 = vand.u32 4294901760, %v548_v54  ;;  %v700_v1 = vand.u32 4294901760, %v699_v52 }
  0xc9   : > { %3905 = vmatprep.subr.mxu0 %v5116_v0  ;;  %3932 = vmatprep.subr.mxu1 %v5116_v0  ;;  %v713_v2 = vsub.f32 %v5527_v43, %v712_v53  ;;  %v726_v3 = vand.u32 4294901760, %v5548_v55  ;;  %v5574_v8 = vsub.f32 %v550_v41, %v5538_v48  ;;  %v720_v9 = vsub.f32 %v5534_v47, %v719_v57 }
  0xca   : > { %3906 = vmatpush3.msra.mxu0 %v5475_v17  ;;  %3933 = vmatpush3.msra.mxu1 %v679_v44  ;;  %v5581_v13 = vand.u32 4294901760, %v547_v60  ;;  %v707_v14 = vand.u32 4294901760, %v706_v58  ;;  %v733_v19 = vand.u32 4294901760, %v5560_v61  ;;  %v5586_v26 = vsub.f32 %v543_v50, %v5562_v62 }
  0xcb   : > { %3907 = vmatprep.subr.mxu0 %v5116_v0  ;;  %3934 = vmatprep.subr.mxu1 %v5116_v0  ;;  %v5589_v31 = vsub.f32 %v549_v49, %v5557_v59  ;;  %v5593_v32 = vand.u32 4294901760, %v546_v7  ;;  %v714_v33 = vand.u32 4294901760, %v713_v2  ;;  %v727_v36 = vsub.f32 %v5548_v55, %v726_v3 }
  0xcc   : > { %3908 = vmatpush3.msra.mxu0 %v5491_v25  ;;  %3935 = vmatpush3.msra.mxu1 %v686_v51  ;;  %v740_v37 = vand.u32 4294901760, %v5574_v8  ;;  %v5601_v38 = vsub.f32 %v548_v54, %v5566_v63  ;;  %v721_v39 = vand.u32 4294901760, %v720_v9  ;;  %v734_v41 = vsub.f32 %v5560_v61, %v733_v19 }
  0xcd   : > { %3909 = vmatprep.subr.mxu0 %v5116_v0  ;;  %3936 = vmatprep.subr.mxu1 %v5116_v0  ;;  %v652_v42 = vand.u32 4294901760, %v5586_v26  ;;  %v747_v44 = vand.u32 4294901760, %v5589_v31  ;;  %v5612_v49 = vsub.f32 %v547_v60, %v5581_v13  ;;  %v728_v50 = vand.u32 4294901760, %v727_v36 }
  0xce   : > { %3910 = vmatpush3.msra.mxu0 %v5495_v28  ;;  %3937 = vmatpush3.msra.mxu1 %v693_v56  ;;  %v741_v51 = vsub.f32 %v5574_v8, %v740_v37  ;;  %v754_v52 = vand.u32 4294901760, %v5601_v38  ;;  %v5622_v54 = vsub.f32 %v546_v7, %v5593_v32  ;;  %v735_v56 = vand.u32 4294901760, %v734_v41 }
  0xcf   : > { %3911 = vmatprep.subr.mxu0 %v5116_v0  ;;  %3938 = vmatprep.subr.mxu1 %v5116_v0  ;;  %v653_v58 = vsub.f32 %v5586_v26, %v652_v42  ;;  %v748_v60 = vsub.f32 %v5589_v31, %v747_v44 }
  0xd0   : > { %3912 = vmatpush3.msra.mxu0 %v5515_v35  ;;  %3939 = vmatpush3.msra.mxu1 %v700_v1  ;;  %v761_v1 = vand.u32 4294901760, %v5612_v49  ;;  %v742_v2 = vand.u32 4294901760, %v741_v51  ;;  %v755_v7 = vsub.f32 %v5601_v38, %v754_v52  ;;  %v768_v9 = vand.u32 4294901760, %v5622_v54 }
  0xd1   : > { %3913 = vmatprep.subr.mxu0 %v5116_v0  ;;  %3940 = vmatprep.subr.mxu1 %v5116_v0 }
  0xd2   : > { %3914 = vmatpush3.msra.mxu0 %v5530_v45  ;;  %3941 = vmatpush3.msra.mxu1 %v707_v14  ;;  %v654_v14 = vand.u32 4294901760, %v653_v58  ;;  %v762_v36 = vsub.f32 %v5612_v49, %v761_v1  ;;  %v769_v41 = vsub.f32 %v5622_v54, %v768_v9 }
  0xd3   : > { %3915 = vmatprep.subr.mxu0 %v5116_v0  ;;  %3942 = vmatprep.subr.mxu1 %v5116_v0 }
  0xd4   : > { %3916 = vmatpush3.msra.mxu0 %v5538_v48  ;;  %3943 = vmatpush3.msra.mxu1 %v714_v33  ;;  %v749_v33 = vand.u32 4294901760, %v748_v60  ;;  %v770_v51 = vand.u32 4294901760, %v769_v41 }
  0xd5   : > { %3917 = vmatprep.subr.mxu0 %v5116_v0  ;;  %3944 = vmatprep.subr.mxu1 %v5116_v0 }
  0xd6   : > { %3918 = vmatpush3.msra.mxu0 %v5557_v59  ;;  %3945 = vmatpush3.msra.mxu1 %v721_v39  ;;  %v756_v39 = vand.u32 4294901760, %v755_v7 }
  0xd7   : > { %3919 = vmatprep.subr.mxu0 %v5116_v0  ;;  %3946 = vmatprep.subr.mxu1 %v5116_v0 }
  0xd8   : > { %3920 = vmatpush3.msra.mxu0 %v5566_v63  ;;  %3947 = vmatpush3.msra.mxu1 %v728_v50  ;;  %v763_v50 = vand.u32 4294901760, %v762_v36 }
  0xd9   : > { %3921 = vmatprep.subr.mxu0 %v5116_v0  ;;  %3948 = vmatprep.subr.mxu1 %v5116_v0 }
  0xda   : > { %3922 = vmatpush3.msra.mxu0 %v5581_v13  ;;  %3949 = vmatpush3.msra.mxu1 %v735_v56 }
  0xdb   : > { %3923 = vmatprep.subr.mxu0 %v5116_v0  ;;  %3950 = vmatprep.subr.mxu1 %v5116_v0 }
  0xdc   : > { %3924 = vmatpush3.msra.mxu0 %v5593_v32  ;;  %3951 = vmatpush3.msra.mxu1 %v742_v2 }
  0xdd   : > { %3952 = vmatprep.subr.mxu1 %v5116_v0  ;;  %3963 = vmatprep.subr.mxu0 %v5116_v0 }
  0xde   : > { %3926 = vmatmul.mubr.f32.vlgmr.msra.gmra.mxu0 %v654_v14  ;;  %3953 = vmatpush3.msra.mxu1 %v749_v33  ;;  %v1216_v33 = vld [vmem:[%s5434_s22 + $0x20] sm:$0xff] }
  0xdf   : > { %3964 = vmatpush3.msra.mxu0 %v5470_v15  ;;  %3954 = vmatprep.subr.mxu1 %v5116_v0 }
  0xe0   : > { %3965 = vmatprep.subr.mxu0 %v5116_v0  ;;  %3955 = vmatpush3.msra.mxu1 %v756_v39 }
  0xe1   : > { %3966 = vmatpush3.msra.mxu0 %v5473_v16  ;;  %3956 = vmatprep.subr.mxu1 %v5116_v0 }
  0xe2   : > { %3967 = vmatprep.subr.mxu0 %v5116_v0  ;;  %3957 = vmatpush3.msra.mxu1 %v763_v50  ;;  %v5951_v50 = vand.u32 4294901760, %v1216_v33 }
  0xe3   : > { %3968 = vmatpush3.msra.mxu0 %v5478_v18  ;;  %3958 = vmatprep.subr.mxu1 %v5116_v0  ;;  %v1223_v18 = vld [vmem:[%s5434_s22 + $0x58] sm:$0xff] }
  0xe4   : > { %3969 = vmatprep.subr.mxu0 %v5116_v0  ;;  %3959 = vmatpush3.msra.mxu1 %v770_v51  ;;  %v1215_v51 = vld [vmem:[%s5434_s22 + $0x18] sm:$0xff] }
  0xe5   : > { %3970 = vmatpush3.msra.mxu0 %v5482_v20  ;;  %3961 = vmatmul.mubr.f32.vlgmr.msra.gmra.mxu1 %v5562_v62  ;;  %v1222_v20 = vld [vmem:[%s5434_s22 + $0x50] sm:$0xff] }
  0xe6   : > { %3971 = vmatprep.subr.mxu0 %v5116_v0  ;;  %3998 = vmatprep.subr.mxu1 %v5116_v0 }
  0xe7   : > { %3972 = vmatpush3.msra.mxu0 %v5485_v21  ;;  %3999 = vmatpush3.msra.mxu1 %v5456_v4  ;;  %v1221_v21 = vld [vmem:[%s5434_s22 + $0x48] sm:$0xff] }
  0xe8   : > { %3973 = vmatprep.subr.mxu0 %v5116_v0  ;;  %4000 = vmatprep.subr.mxu1 %v5116_v0 }
  0xe9   : > { %3974 = vmatpush3.msra.mxu0 %v5499_v30  ;;  %4001 = vmatpush3.msra.mxu1 %v5458_v5 }
  0xea   : > { %3975 = vmatprep.subr.mxu0 %v5116_v0  ;;  %4002 = vmatprep.subr.mxu1 %v5116_v0 }
  0xeb   : > { %3976 = vmatpush3.msra.mxu0 %v5512_v34  ;;  %4003 = vmatpush3.msra.mxu1 %v5460_v6 }
  0xec   : > { %3977 = vmatprep.subr.mxu0 %v5116_v0  ;;  %4004 = vmatprep.subr.mxu1 %v5116_v0 }
  0xed   : > { %3978 = vmatpush3.msra.mxu0 %v5527_v43  ;;  %4005 = vmatpush3.msra.mxu1 %v5462_v10 }
  0xee   : > { %3979 = vmatprep.subr.mxu0 %v5116_v0  ;;  %4006 = vmatprep.subr.mxu1 %v5116_v0 }
  0xef   : > { %3980 = vmatpush3.msra.mxu0 %v5534_v47  ;;  %4007 = vmatpush3.msra.mxu1 %v5464_v11 }
  0xf0   : > { %3981 = vmatprep.subr.mxu0 %v5116_v0  ;;  %4008 = vmatprep.subr.mxu1 %v5116_v0 }
  0xf1   : > { %3982 = vmatpush3.msra.mxu0 %v5548_v55  ;;  %4009 = vmatpush3.msra.mxu1 %v5466_v12 }
  0xf2   : > { %3983 = vmatprep.subr.mxu0 %v5116_v0  ;;  %4010 = vmatprep.subr.mxu1 %v5116_v0 }
  0xf3   : > { %3984 = vmatpush3.msra.mxu0 %v5560_v61  ;;  %4011 = vmatpush3.msra.mxu1 %v5475_v17 }
  0xf4   : > { %3985 = vmatprep.subr.mxu0 %v5116_v0  ;;  %4012 = vmatprep.subr.mxu1 %v5116_v0 }
  0xf5   : > { %3986 = vmatpush3.msra.mxu0 %v5574_v8  ;;  %4013 = vmatpush3.msra.mxu1 %v5491_v25 }
  0xf6   : > { %3987 = vmatprep.subr.mxu0 %v5116_v0  ;;  %4014 = vmatprep.subr.mxu1 %v5116_v0 }
  0xf7   : > { %3988 = vmatpush3.msra.mxu0 %v5589_v31  ;;  %4015 = vmatpush3.msra.mxu1 %v5495_v28 }
  0xf8   : > { %3989 = vmatprep.subr.mxu0 %v5116_v0  ;;  %4016 = vmatprep.subr.mxu1 %v5116_v0 }
  0xf9   : > { %3990 = vmatpush3.msra.mxu0 %v5601_v38  ;;  %4017 = vmatpush3.msra.mxu1 %v5515_v35 }
  0xfa   : > { %3991 = vmatprep.subr.mxu0 %v5116_v0  ;;  %4018 = vmatprep.subr.mxu1 %v5116_v0 }
  0xfb   : > { %3992 = vmatpush3.msra.mxu0 %v5612_v49  ;;  %4019 = vmatpush3.msra.mxu1 %v5530_v45 }
  0xfc   : > { %3993 = vmatprep.subr.mxu0 %v5116_v0  ;;  %4020 = vmatprep.subr.mxu1 %v5116_v0 }
  0xfd   : > { %3994 = vmatpush3.msra.mxu0 %v5622_v54  ;;  %3995 = vmatprep.mubr.msk.f32.mxu0 %vm5117_vm0, %v5116_v0  ;;  %v1218_v54 = vld [vmem:[%s5434_s22 + $0x30] sm:$0xff] }
  0xfe   : > { %4021 = vmatpush3.msra.mxu1 %v5538_v48  ;;  %3996 = vmatmul.mubr.f32.vlgmr.msra.gmra.mxu0 %v5586_v26  ;;  %v5928_v60 = vand.u32 4294901760, %v1218_v54 }
  0xff   : > { %4022 = vmatprep.subr.mxu1 %v5116_v0  ;;  %4033 = vmatprep.subr.mxu0 %v5116_v0 }
 0x100   : > { %4023 = vmatpush3.msra.mxu1 %v5557_v59  ;;  %4034 = vmatpush3.msra.mxu0 %v663_v22  ;;  %v5840_v22 = vand.u32 4294901760, %v1223_v18 }
 0x101   : > { %4024 = vmatprep.subr.mxu1 %v5116_v0  ;;  %4035 = vmatprep.subr.mxu0 %v5116_v0 }
 0x102   : > { %4025 = vmatpush3.msra.mxu1 %v5566_v63  ;;  %4036 = vmatpush3.msra.mxu0 %v670_v23  ;;  %v5843_v23 = vand.u32 4294901760, %v1222_v20  ;;  %v5860_v34 = vsub.f32 %v1223_v18, %v5840_v22  ;;  %v5966_v18 = vand.u32 4294901760, %v1215_v51 }
 0x103   : > { %4026 = vmatprep.subr.mxu1 %v5116_v0  ;;  %4037 = vmatprep.subr.mxu0 %v5116_v0 }
 0x104   : > { %4027 = vmatpush3.msra.mxu1 %v5581_v13  ;;  %4038 = vmatpush3.msra.mxu0 %v677_v24  ;;  %v5845_v24 = vand.u32 4294901760, %v1221_v21 }
 0x105   : > { %4028 = vmatprep.subr.mxu1 %v5116_v0  ;;  %4039 = vmatprep.subr.mxu0 %v5116_v0 }
 0x106   : > { %4029 = vmatpush3.msra.mxu1 %v5593_v32  ;;  %4030 = vmatprep.mubr.msk.f32.mxu1 %vm5117_vm0, %v5116_v0 }
 0x107   : > { %4040 = vmatpush3.msra.mxu0 %v684_v27  ;;  %4031 = vmatmul.mubr.f32.vlgmr.msra.gmra.mxu1 %v652_v42  ;;  %v1219_v42 = vld [vmem:[%s5434_s22 + $0x38] sm:$0xff] }
 0x108   : > { %4041 = vmatprep.subr.mxu0 %v5116_v0  ;;  %4068 = vmatprep.subr.mxu1 %v5116_v0 }
 0x109   : > { %4042 = vmatpush3.msra.mxu0 %v691_v29  ;;  %4069 = vmatpush3.msra.mxu1 %v5456_v4  ;;  %v1227_v4 = vld [vmem:[%s5434_s22 + $0x78] sm:$0xff] }
 0x10a   : > { %4043 = vmatprep.subr.mxu0 %v5116_v0  ;;  %4070 = vmatprep.subr.mxu1 %v5116_v0 }
 0x10b   : > { %4044 = vmatpush3.msra.mxu0 %v698_v40  ;;  %4071 = vmatpush3.msra.mxu1 %v5458_v5  ;;  %v5822_v5 = vand.u32 4294901760, %v1227_v4  ;;  %v5867_v40 = vsub.f32 %v1221_v21, %v5845_v24 }
 0x10c   : > { %4045 = vmatprep.subr.mxu0 %v5116_v0  ;;  %4072 = vmatprep.subr.mxu1 %v5116_v0 }
 0x10d   : > { %4046 = vmatpush3.msra.mxu0 %v705_v46  ;;  %4073 = vmatpush3.msra.mxu1 %v5460_v6  ;;  %v1226_v6 = vld [vmem:[%s5434_s22 + $0x70] sm:$0xff] }
 0x10e   : > { %4047 = vmatprep.subr.mxu0 %v5116_v0  ;;  %4074 = vmatprep.subr.mxu1 %v5116_v0  ;;  %v5830_v15 = vand.u32 4294901760, %v1226_v6 }
 0x10f   : > { %4048 = vmatpush3.msra.mxu0 %v712_v53  ;;  %4075 = vmatpush3.msra.mxu1 %v5462_v10  ;;  %v1225_v10 = vld [vmem:[%s5434_s22 + $0x68] sm:$0xff]  ;;  %v1350_v53 = vand.u32 4294901760, %v5860_v34 }
 0x110   : > { %4049 = vmatprep.subr.mxu0 %v5116_v0  ;;  %4076 = vmatprep.subr.mxu1 %v5116_v0  ;;  %v5832_v16 = vand.u32 4294901760, %v1225_v10 }
 0x111   : > { %4050 = vmatpush3.msra.mxu0 %v719_v57  ;;  %4077 = vmatpush3.msra.mxu1 %v5464_v11  ;;  %v1224_v11 = vld [vmem:[%s5434_s22 + $0x60] sm:$0xff] }
 0x112   : > { %4051 = vmatprep.subr.mxu0 %v5116_v0  ;;  %4078 = vmatprep.subr.mxu1 %v5116_v0  ;;  %v5853_v29 = vsub.f32 %v1225_v10, %v5832_v16 }
 0x113   : > { %4052 = vmatpush3.msra.mxu0 %v726_v3  ;;  %4079 = vmatpush3.msra.mxu1 %v5466_v12  ;;  %v5828_v12 = vsub.f32 %v1227_v4, %v5822_v5 }
 0x114   : > { %4053 = vmatprep.subr.mxu0 %v5116_v0  ;;  %4080 = vmatprep.subr.mxu1 %v5116_v0  ;;  %v1336_v47 = vand.u32 4294901760, %v5853_v29 }
 0x115   : > { %4054 = vmatpush3.msra.mxu0 %v733_v19  ;;  %4081 = vmatpush3.msra.mxu1 %v5475_v17  ;;  %v5834_v17 = vand.u32 4294901760, %v1224_v11  ;;  %v1322_v27 = vand.u32 4294901760, %v5828_v12  ;;  %v1364_v19 = vand.u32 4294901760, %v5867_v40 }
 0x116   : > { %4055 = vmatprep.subr.mxu0 %v5116_v0  ;;  %4082 = vmatprep.subr.mxu1 %v5116_v0 }
 0x117   : > { %4056 = vmatpush3.msra.mxu0 %v740_v37  ;;  %4083 = vmatpush3.msra.mxu1 %v5491_v25  ;;  %v1220_v25 = vld [vmem:[%s5434_s22 + $0x40] sm:$0xff]  ;;  %v5856_v30 = vsub.f32 %v1224_v11, %v5834_v17  ;;  %v1365_v38 = vsub.f32 %v5867_v40, %v1364_v19  ;;  %v5962_v11 = vsub.f32 %v1216_v33, %v5951_v50 }
 0x118   : > { %4057 = vmatprep.subr.mxu0 %v5116_v0  ;;  %4084 = vmatprep.subr.mxu1 %v5116_v0  ;;  %v5869_v43 = vand.u32 4294901760, %v1220_v25 }
 0x119   : > { %4058 = vmatpush3.msra.mxu0 %v747_v44  ;;  %4085 = vmatpush3.msra.mxu1 %v5495_v28  ;;  %v5850_v28 = vsub.f32 %v1226_v6, %v5830_v15  ;;  %v1366_v56 = vand.u32 4294901760, %v1365_v38 }
 0x11a   : > { %4059 = vmatprep.subr.mxu0 %v5116_v0  ;;  %4086 = vmatprep.subr.mxu1 %v5116_v0  ;;  %v5882_v57 = vsub.f32 %v1220_v25, %v5869_v43 }
 0x11b   : > { %4060 = vmatpush3.msra.mxu0 %v754_v52  ;;  %4087 = vmatpush3.msra.mxu1 %v5515_v35  ;;  %v5863_v35 = vsub.f32 %v1222_v20, %v5843_v23  ;;  %v1329_v46 = vand.u32 4294901760, %v5850_v28  ;;  %v5919_v52 = vand.u32 4294901760, %v1219_v42  ;;  %v1214_v20 = vld [vmem:[%s5434_s22 + $0x10] sm:$0xff] }
 0x11c   : > { %4061 = vmatprep.subr.mxu0 %v5116_v0  ;;  %4088 = vmatprep.subr.mxu1 %v5116_v0 }
 0x11d   : > { %4062 = vmatpush3.msra.mxu0 %v761_v1  ;;  %4089 = vmatpush3.msra.mxu1 %v5530_v45  ;;  %v1323_v45 = vsub.f32 %v5828_v12, %v1322_v27  ;;  %v1357_v55 = vand.u32 4294901760, %v5863_v35  ;;  %v1330_v61 = vsub.f32 %v5850_v28, %v1329_v46  ;;  %v5926_v58 = vsub.f32 %v1219_v42, %v5919_v52  ;;  %v1217_v1 = vld [vmem:[%s5434_s22 + $0x28] sm:$0xff] }
 0x11e   : > { %4063 = vmatprep.subr.mxu0 %v5116_v0  ;;  %4090 = vmatprep.subr.mxu1 %v5116_v0  ;;  %v5938_v14 = vand.u32 4294901760, %v1217_v1 }
 0x11f   : > { %4064 = vmatpush3.msra.mxu0 %v768_v9  ;;  %4065 = vmatprep.mubr.msk.f32.mxu0 %vm5117_vm0, %v5116_v0  ;;  %v1331_v3 = vand.u32 4294901760, %v1330_v61  ;;  %v1358_v31 = vsub.f32 %v5863_v35, %v1357_v55  ;;  %v1378_v7 = vand.u32 4294901760, %v5926_v58  ;;  %v5936_v9 = vsub.f32 %v1218_v54, %v5928_v60 }
 0x120   : > { %4091 = vmatpush3.msra.mxu1 %v5538_v48  ;;  %4066 = vmatmul.mubr.f32.vlgmr.msra.gmra.mxu0 %v5562_v62  ;;  %v1343_v48 = vand.u32 4294901760, %v5856_v30  ;;  %v5949_v41 = vsub.f32 %v1217_v1, %v5938_v14  ;;  %v5978_v61 = vsub.f32 %v1215_v51, %v5966_v18 }
 0x121   : > { %4092 = vmatprep.subr.mxu1 %v5116_v0  ;;  %4100 = vmatprep.mubr.msk.f32.mxu1 %vm5117_vm0, %v5116_v0  ;;  %v1359_v44 = vand.u32 4294901760, %v1358_v31  ;;  %v1379_v36 = vsub.f32 %v5926_v58, %v1378_v7  ;;  %v1385_v39 = vand.u32 4294901760, %v5936_v9  ;;  %v1212_v31 = vld [vmem:[%s5434_s22] sm:$0xff] }
 0x122   : > { %4093 = vmatpush3.msra.mxu1 %v5557_v59  ;;  %4103 = vmatprep.subr.mxu0 %v5116_v0  ;;  %v1324_v59 = vand.u32 4294901760, %v1323_v45  ;;  %v1392_v10 = vand.u32 4294901760, %v5949_v41  ;;  %v7057_v45 = vand.u32 4294901760, %v5962_v11 }
 0x123   : > { %4094 = vmatprep.subr.mxu1 %v5116_v0  ;;  %4135 = vmatprep.mubr.msk.f32.mxu0 %vm5117_vm0, %v5116_v0  ;;  %v1380_v4 = vand.u32 4294901760, %v1379_v36  ;;  %v1386_v6 = vsub.f32 %v5936_v9, %v1385_v39 }
 0x124   : > { %4095 = vmatpush3.msra.mxu1 %v5566_v63  ;;  %4104 = vmatpush3.msra.mxu0 %v5822_v5  ;;  %v1344_v63 = vsub.f32 %v5856_v30, %v1343_v48  ;;  %v1393_v25 = vsub.f32 %v5949_v41, %v1392_v10 }
 0x125   : > { %4096 = vmatprep.subr.mxu1 %v5116_v0  ;;  %4105 = vmatprep.subr.mxu0 %v5116_v0  ;;  %v1387_v21 = vand.u32 4294901760, %v1386_v6 }
 0x126   : > { %4097 = vmatpush3.msra.mxu1 %v5581_v13  ;;  %4106 = vmatpush3.msra.mxu0 %v5830_v15  ;;  %v1351_v13 = vsub.f32 %v5860_v34, %v1350_v53  ;;  %v1345_v26 = vand.u32 4294901760, %v1344_v63  ;;  %v1394_v63 = vand.u32 4294901760, %v1393_v25 }
 0x127   : > { %4098 = vmatprep.subr.mxu1 %v5116_v0  ;;  %4107 = vmatprep.subr.mxu0 %v5116_v0 }
 0x128   : > { %4099 = vmatpush3.msra.mxu1 %v5593_v32  ;;  %4108 = vmatpush3.msra.mxu0 %v5832_v16  ;;  %v1371_v32 = vand.u32 4294901760, %v5882_v57  ;;  %v1352_v37 = vand.u32 4294901760, %v1351_v13 }
 0x129   : > { %4101 = vmatmul.mubr.f32.vlgmr.msra.gmra.mxu1 %v5562_v62  ;;  %4138 = vmatprep.subr.mxu1 %v5116_v0  ;;  %v1337_v62 = vsub.f32 %v5853_v29, %v1336_v47 }
 0x12a   : > { %4170 = vmatprep.mubr.msk.f32.mxu1 %vm5117_vm0, %v5116_v0  ;;  %4109 = vmatprep.subr.mxu0 %v5116_v0  ;;  %v1372_v49 = vsub.f32 %v5882_v57, %v1371_v32 }
 0x12b   : > { %4110 = vmatpush3.msra.mxu0 %v5834_v17  ;;  %4139 = vmatpush3.msra.mxu1 %v1324_v59  ;;  %v1338_v8 = vand.u32 4294901760, %v1337_v62  ;;  %v5974_v59 = vand.u32 4294901760, %v1214_v20  ;;  %v1213_v62 = vld [vmem:[%s5434_s22 + $0x8] sm:$0xff]  ;;  %s5000_s22 = sshll.u32 %s5119_s18, 4  ;;  %s5001_s22 = int_to_ptr.vmem [resolvable:$false] %s5000_s22 }
 0x12c   : > { %4111 = vmatprep.subr.mxu0 %v5116_v0  ;;  %4140 = vmatprep.subr.mxu1 %v5116_v0  ;;  %v1373_v2 = vand.u32 4294901760, %v1372_v49  ;;  %v5988_v13 = vand.u32 4294901760, %v1213_v62  ;;  %s5002_s10 = scalar_lea.vmem %s5001_s22, 256  ;;  %p5003_p1 = scmp.lt.s32.totalorder %s3256_s21, %s5001_s22 }
 0x12d   : > { %4112 = vmatpush3.msra.mxu0 %v5840_v22  ;;  %4141 = vmatpush3.msra.mxu1 %v1331_v3  ;;  %v1400_v3 = vsub.f32 %v5962_v11, %v7057_v45 }
 0x12e   : > { %4113 = vmatprep.subr.mxu0 %v5116_v0  ;;  %4142 = vmatprep.subr.mxu1 %v5116_v0  ;;  %v5997_v42 = vsub.f32 %v1213_v62, %v5988_v13 }
 0x12f   : > { %4114 = vmatpush3.msra.mxu0 %v5843_v23  ;;  %4143 = vmatpush3.msra.mxu1 %v1338_v8  ;;  %v5986_v8 = vsub.f32 %v1214_v20, %v5974_v59 }
 0x130   : > { %4115 = vmatprep.subr.mxu0 %v5116_v0  ;;  %4144 = vmatprep.subr.mxu1 %v5116_v0 }
 0x131   : > { %4116 = vmatpush3.msra.mxu0 %v5845_v24  ;;  %4145 = vmatpush3.msra.mxu1 %v1345_v26  ;;  %v7056_v26 = vand.u32 4294901760, %v5978_v61  ;;  %v7055_v38 = vand.u32 4294901760, %v5986_v8 }
 0x132   : > { %4117 = vmatprep.subr.mxu0 %v5116_v0  ;;  %4146 = vmatprep.subr.mxu1 %v5116_v0 }
 0x133   : > { %4118 = vmatpush3.msra.mxu0 %v5869_v43  ;;  %4147 = vmatpush3.msra.mxu1 %v1352_v37  ;;  %v1401_v37 = vand.u32 4294901760, %v1400_v3  ;;  %v1407_v49 = vsub.f32 %v5978_v61, %v7056_v26  ;;  %v1414_v54 = vsub.f32 %v5986_v8, %v7055_v38 }
 0x134   : > { %4119 = vmatprep.subr.mxu0 %v5116_v0  ;;  %4148 = vmatprep.subr.mxu1 %v5116_v0 }
 0x135   : > { %4120 = vmatpush3.msra.mxu0 %v5919_v52  ;;  %4149 = vmatpush3.msra.mxu1 %v1359_v44  ;;  %v5999_v44 = vand.u32 4294901760, %v1212_v31  ;;  %v1415_v33 = vand.u32 4294901760, %v1414_v54  ;;  %v3475_v54 = vld [vmem:[%s7025_s6] ss:$0 sm:$0xff] }
 0x136   : > { %4121 = vmatprep.subr.mxu0 %v5116_v0  ;;  %4150 = vmatprep.subr.mxu1 %v5116_v0 }
 0x137   : > { %4122 = vmatpush3.msra.mxu0 %v5928_v60  ;;  %4151 = vmatpush3.msra.mxu1 %v1366_v56  ;;  %v7054_v56 = vand.u32 4294901760, %v5997_v42  ;;  %v6012_v1 = vsub.f32 %v1212_v31, %v5999_v44 }
 0x138   : > { %4123 = vmatprep.subr.mxu0 %v5116_v0  ;;  %4152 = vmatprep.subr.mxu1 %v5116_v0 }
 0x139   : > { %4124 = vmatpush3.msra.mxu0 %v5938_v14  ;;  %4153 = vmatpush3.msra.mxu1 %v1373_v2  ;;  %v1408_v2 = vand.u32 4294901760, %v1407_v49  ;;  %v1421_v36 = vsub.f32 %v5997_v42, %v7054_v56  ;;  %v7053_v51 = vand.u32 4294901760, %v6012_v1  ;;  %v544_v56 = vld [vmem:[%s454_s30] sm:$0xff]  ;;  %s4996_s30 = scalar_lea.vmem %s3256_s21, 128 }
 0x13a   : > { %4125 = vmatprep.subr.mxu0 %v5116_v0  ;;  %4154 = vmatprep.subr.mxu1 %v5116_v0  ;;  %p4997_p3 = scmp.ne.s32.totalorder %s3256_s21, %s4996_s30  ;;  %p5004_p4 = scmp.lt.s32.totalorder %s5002_s10, %s4996_s30 }
 0x13b   : > { %4126 = vmatpush3.msra.mxu0 %v5951_v50  ;;  %4155 = vmatpush3.msra.mxu1 %v1380_v4  ;;  %v1422_v4 = vand.u32 4294901760, %v1421_v36  ;;  %v1428_v6 = vsub.f32 %v6012_v1, %v7053_v51 }
 0x13c   : > { %4127 = vmatprep.subr.mxu0 %v5116_v0  ;;  %4156 = vmatprep.subr.mxu1 %v5116_v0  ;;  %p4998_p2 = pnand %p4997_p3, %p7118_p5  ;;  %p5005_p6 = por %p5004_p4, %p5003_p1 }
 0x13d   : > { %4128 = vmatpush3.msra.mxu0 %v5966_v18  ;;  %4157 = vmatpush3.msra.mxu1 %v1387_v21  ;;  %v1429_v20 = vand.u32 4294901760, %v1428_v6 }
 0x13e   : > { %4129 = vmatprep.subr.mxu0 %v5116_v0  ;;  %4158 = vmatprep.subr.mxu1 %v5116_v0  ;;  %p4999_p13 = pneg %p4998_p2 }
 0x13f   : > { %4130 = vmatpush3.msra.mxu0 %v5974_v59  ;;  %4159 = vmatpush3.msra.mxu1 %v1394_v63 }
 0x140   : > { %4131 = vmatprep.subr.mxu0 %v5116_v0  ;;  %4160 = vmatprep.subr.mxu1 %v5116_v0  ;;  %p5006_p10 = pnand %p5005_p6, %p4999_p13 }
 0x141   : > { %4132 = vmatpush3.msra.mxu0 %v5988_v13  ;;  %4161 = vmatpush3.msra.mxu1 %v1401_v37 }
 0x142   : > { %4133 = vmatprep.subr.mxu0 %v5116_v0  ;;  %4162 = vmatprep.subr.mxu1 %v5116_v0 }
 0x143   : > { %4134 = vmatpush3.msra.mxu0 %v5999_v44  ;;  %4163 = vmatpush3.msra.mxu1 %v1408_v2 }
 0x144   : > { %4173 = vmatprep.subr.mxu0 %v5116_v0  ;;  %4164 = vmatprep.subr.mxu1 %v5116_v0 }
 0x145   : > { %4165 = vmatpush3.msra.mxu1 %v1415_v33 }
 0x146   : > { %4166 = vmatprep.subr.mxu1 %v5116_v0 }
 0x147   : > { %4167 = vmatpush3.msra.mxu1 %v1422_v4 }
 0x148   : > { %4168 = vmatprep.subr.mxu1 %v5116_v0 }
 0x149   : > { %4169 = vmatpush3.msra.mxu1 %v1429_v20 }
 0x14a   : > { %4208 = vmatprep.subr.mxu1 %v5116_v0 }
 0x19e   : > { %v656_v21 = vpop.f32.mrf.mxu0 }
 0x19f   : > { %v657_v2 = vadd.f32 %v3475_v54, %v656_v21 }
 0x1a0   : > { %v3927_v25 = vpop.f32.mrf.mxu0 }
 0x1a5   : > { %v807_v62 = vpop.f32.mrf.mxu1 }
 0x1a6   : > { %v808_v36 = vadd.f32 %v807_v62, %v657_v2 }
 0x1a7   : > { %v3962_v63 = vpop.f32.mrf.mxu1 }
 0x1be   : > { %v911_v3 = vpop.f32.mrf.mxu0 }
 0x1bf   : > { %v912_v6 = vadd.f32 %v911_v3, %v808_v36 }
 0x1c0   : > { %v3997_v31 = vpop.f32.mrf.mxu0 }
 0x1c7   : > { %v1000_v37 = vpop.f32.mrf.mxu1 }
 0x1c8   : > { %v1001_v20 = vadd.f32 %v1000_v37, %v912_v6 }
 0x1c9   : > { %v4032_v49 = vpop.f32.mrf.mxu1 }
 0x1e0   : > { %v1119_v33 = vpop.f32.mrf.mxu0 }
 0x1e1   : > { %v1120_v51 = vadd.f32 %v1119_v33, %v1001_v20 }
 0x1e2   : > { %v4067_v4 = vpop.f32.mrf.mxu0 }
 0x1e9   : > { %v1206_v25 = vpop.f32.mrf.mxu1 }
 0x1ea   : > { %v1207_v38 = vadd.f32 %v1206_v25, %v1120_v51 }
 0x1eb   : > { %v4102_v63 = vpop.f32.mrf.mxu1 }
 0x1ec   : > { %v1210_v26 = vadd.f32 %v1207_v38, %v544_v56 }
 0x1ee   : > { %v1211_v31 = vmul.f32 0.70710677, %v1210_v26 }
 0x1f0   : > { %v6034_v45 = vand.u32 4294901760, %v1211_v31 }
 0x1f2   : > { %v6037_v49 = vsub.f32 %v1211_v31, %v6034_v45  ;;  %4171 = vmatmul.mubr.f32.vlgmr.msra.gmra.mxu1 %v6034_v45 }
 0x1f3   : > { %4209 = vmatpush3.msra.mxu1 %v5822_v5  ;;  %4240 = vmatprep.mubr.msk.f32.mxu1 %vm5117_vm0, %v5116_v0 }
 0x1f4   : > { %v1311_v21 = vand.u32 4294901760, %v6037_v49  ;;  %4210 = vmatprep.subr.mxu1 %v5116_v0 }
 0x1f5   : > { %4211 = vmatpush3.msra.mxu1 %v5830_v15 }
 0x1f6   : > { %4212 = vmatprep.subr.mxu1 %v5116_v0  ;;  %v1312_v26 = vsub.f32 %v6037_v49, %v1311_v21 }
 0x1f7   : > { %4213 = vmatpush3.msra.mxu1 %v5832_v16 }
 0x1f8   : > { %4214 = vmatprep.subr.mxu1 %v5116_v0  ;;  %v1313_v38 = vand.u32 4294901760, %v1312_v26 }
 0x1f9   : > { %4215 = vmatpush3.msra.mxu1 %v5834_v17 }
 0x1fa   : > { %4216 = vmatprep.subr.mxu1 %v5116_v0  ;;  %4136 = vmatmul.mubr.f32.vlgmr.msra.gmra.mxu0 %v1313_v38 }
 0x1fb   : > { %4174 = vmatpush3.msra.mxu0 %v5828_v12  ;;  %4217 = vmatpush3.msra.mxu1 %v5840_v22  ;;  %v7104_v12 = vand.u32 4294901760, %v5978_v61 }
 0x1fc   : > { %4175 = vmatprep.subr.mxu0 %v5116_v0  ;;  %4218 = vmatprep.subr.mxu1 %v5116_v0 }
 0x1fd   : > { %4176 = vmatpush3.msra.mxu0 %v5850_v28  ;;  %4219 = vmatpush3.msra.mxu1 %v5843_v23 }
 0x1fe   : > { %4177 = vmatprep.subr.mxu0 %v5116_v0  ;;  %4220 = vmatprep.subr.mxu1 %v5116_v0 }
 0x1ff   : > { %4178 = vmatpush3.msra.mxu0 %v5853_v29  ;;  %4221 = vmatpush3.msra.mxu1 %v5845_v24 }
 0x200   : > { %4179 = vmatprep.subr.mxu0 %v5116_v0  ;;  %4222 = vmatprep.subr.mxu1 %v5116_v0 }
 0x201   : > { %4180 = vmatpush3.msra.mxu0 %v5856_v30  ;;  %4223 = vmatpush3.msra.mxu1 %v5869_v43 }
 0x202   : > { %4181 = vmatprep.subr.mxu0 %v5116_v0  ;;  %4224 = vmatprep.subr.mxu1 %v5116_v0 }
 0x203   : > { %4182 = vmatpush3.msra.mxu0 %v5860_v34  ;;  %4225 = vmatpush3.msra.mxu1 %v5919_v52 }
 0x204   : > { %4183 = vmatprep.subr.mxu0 %v5116_v0  ;;  %4226 = vmatprep.subr.mxu1 %v5116_v0 }
 0x205   : > { %4184 = vmatpush3.msra.mxu0 %v5863_v35  ;;  %4227 = vmatpush3.msra.mxu1 %v5928_v60  ;;  %v1871_v35 = vlaneseq }
 0x206   : > { %4185 = vmatprep.subr.mxu0 %v5116_v0  ;;  %4228 = vmatprep.subr.mxu1 %v5116_v0 }
 0x207   : > { %4186 = vmatpush3.msra.mxu0 %v5867_v40  ;;  %4229 = vmatpush3.msra.mxu1 %v5938_v14  ;;  %v6206_v40 = vld [vmem:[%s542_s8] sm:$0x1] }
 0x208   : > { %4187 = vmatprep.subr.mxu0 %v5116_v0  ;;  %4230 = vmatprep.subr.mxu1 %v5116_v0  ;;  %vm1869_vm1 = vcmp.gt.f32.partialorder %v6206_v40, 0.5 }
 0x209   : > { %4188 = vmatpush3.msra.mxu0 %v5882_v57  ;;  %4231 = vmatpush3.msra.mxu1 %v5951_v50  ;;  %v5118_v57 = vmov 0  }
 0x20a   : > { %4189 = vmatprep.subr.mxu0 %v5116_v0  ;;  %4232 = vmatprep.subr.mxu1 %v5116_v0 }
 0x20b   : > { %4190 = vmatpush3.msra.mxu0 %v5926_v58  ;;  %4233 = vmatpush3.msra.mxu1 %v5966_v18 }
 0x20c   : > { %4191 = vmatprep.subr.mxu0 %v5116_v0  ;;  %4234 = vmatprep.subr.mxu1 %v5116_v0 }
 0x20d   : > { %4192 = vmatpush3.msra.mxu0 %v5936_v9  ;;  %4235 = vmatpush3.msra.mxu1 %v5974_v59 }
 0x20e   : > { %4193 = vmatprep.subr.mxu0 %v5116_v0  ;;  %4236 = vmatprep.subr.mxu1 %v5116_v0 }
 0x20f   : > { %4194 = vmatpush3.msra.mxu0 %v5949_v41  ;;  %4237 = vmatpush3.msra.mxu1 %v5988_v13  ;;  %v1908_v41 = vld [vmem:[%s5436_s15 + $0x70] sm:$0xff] }
 0x210   : > { %4195 = vmatprep.subr.mxu0 %v5116_v0  ;;  %4238 = vmatprep.subr.mxu1 %v5116_v0 }
 0x211   : > { %4196 = vmatpush3.msra.mxu0 %v5962_v11  ;;  %4239 = vmatpush3.msra.mxu1 %v5999_v44 }
 0x212   : > { %4197 = vmatprep.subr.mxu0 %v5116_v0  ;;  %4241 = vmatmul.mubr.f32.vlgmr.msra.gmra.mxu1 %v1311_v21 }
 0x213   : > { %4278 = vmatprep.subr.mxu1 %v5116_v0  ;;  %4198 = vmatpush3.msra.mxu0 %v5978_v61  ;;  %v1904_v61 = vld [vmem:[%s5436_s15 + $0x50] sm:$0xff] }
 0x214   : > { %4279 = vmatpush3.msra.mxu1 %v5822_v5  ;;  %4199 = vmatprep.subr.mxu0 %v5116_v0  ;;  %v7103_v5 = vand.u32 4294901760, %v5962_v11  ;;  %v6222_v11 = vand.u32 4294901760, %v1908_v41 }
 0x215   : > { %4280 = vmatprep.subr.mxu1 %v5116_v0  ;;  %4200 = vmatpush3.msra.mxu0 %v5986_v8 }
 0x216   : > { %4281 = vmatpush3.msra.mxu1 %v5830_v15  ;;  %4201 = vmatprep.subr.mxu0 %v5116_v0  ;;  %v7105_v15 = vand.u32 4294901760, %v5986_v8 }
 0x217   : > { %4282 = vmatprep.subr.mxu1 %v5116_v0  ;;  %4202 = vmatpush3.msra.mxu0 %v5997_v42 }
 0x218   : > { %4283 = vmatpush3.msra.mxu1 %v5832_v16  ;;  %4203 = vmatprep.subr.mxu0 %v5116_v0  ;;  %v7106_v16 = vand.u32 4294901760, %v5997_v42  ;;  %v6233_v42 = vand.u32 4294901760, %v1904_v61 }
 0x219   : > { %4284 = vmatprep.subr.mxu1 %v5116_v0  ;;  %4204 = vmatpush3.msra.mxu0 %v6012_v1 }
 0x21a   : > { %4205 = vmatprep.mubr.msk.f32.mxu0 %vm5117_vm0, %v5116_v0  ;;  %4285 = vmatpush3.msra.mxu1 %v5834_v17  ;;  %v7107_v17 = vand.u32 4294901760, %v6012_v1  ;;  %v6240_v1 = vsub.f32 %v1908_v41, %v6222_v11  ;;  %v6260_v36 = vsub.f32 %v1904_v61, %v6233_v42 }
 0x21b   : > { %4206 = vmatmul.mubr.f32.vlgmr.msra.gmra.mxu0 %v6037_v49  ;;  %4243 = vmatprep.subr.mxu0 %v5116_v0 }
 0x21c   : > { %4286 = vmatprep.subr.mxu1 %v5116_v0  ;;  %4244 = vmatpush3.msra.mxu0 %v1322_v27  ;;  %v2011_v2 = vand.u32 4294901760, %v6240_v1  ;;  %v2039_v38 = vand.u32 4294901760, %v6260_v36 }
 0x21d   : > { %4287 = vmatpush3.msra.mxu1 %v5840_v22  ;;  %4245 = vmatprep.subr.mxu0 %v5116_v0 }
 0x21e   : > { %4288 = vmatprep.subr.mxu1 %v5116_v0  ;;  %4246 = vmatpush3.msra.mxu0 %v1329_v46  ;;  %v2012_v25 = vsub.f32 %v6240_v1, %v2011_v2 }
 0x21f   : > { %4289 = vmatpush3.msra.mxu1 %v5843_v23  ;;  %4247 = vmatprep.subr.mxu0 %v5116_v0 }
 0x220   : > { %4290 = vmatprep.subr.mxu1 %v5116_v0  ;;  %4248 = vmatpush3.msra.mxu0 %v1336_v47  ;;  %v2013_v21 = vand.u32 4294901760, %v2012_v25 }
 0x221   : > { %4291 = vmatpush3.msra.mxu1 %v5845_v24  ;;  %4249 = vmatprep.subr.mxu0 %v5116_v0 }
 0x222   : > { %4292 = vmatprep.subr.mxu1 %v5116_v0  ;;  %4250 = vmatpush3.msra.mxu0 %v1343_v48 }
 0x223   : > { %4293 = vmatpush3.msra.mxu1 %v5869_v43  ;;  %4251 = vmatprep.subr.mxu0 %v5116_v0  ;;  %v6208_v43 = vshrl.u32 %v1871_v35, 7  ;;  %v1902_v35 = vld [vmem:[%s5436_s15 + $0x40] sm:$0xff] }
 0x224   : > { %4294 = vmatprep.subr.mxu1 %v5116_v0  ;;  %4252 = vmatpush3.msra.mxu0 %v1350_v53 }
 0x225   : > { %4295 = vmatpush3.msra.mxu1 %v5919_v52  ;;  %4253 = vmatprep.subr.mxu0 %v5116_v0  ;;  %v1873_v53 = vsub.s32 0, %v6208_v43 }
 0x226   : > { %4296 = vmatprep.subr.mxu1 %v5116_v0  ;;  %4254 = vmatpush3.msra.mxu0 %v1357_v55 }
 0x227   : > { %4297 = vmatpush3.msra.mxu1 %v5928_v60  ;;  %4255 = vmatprep.subr.mxu0 %v5116_v0 }
 0x228   : > { %4298 = vmatprep.subr.mxu1 %v5116_v0  ;;  %4256 = vmatpush3.msra.mxu0 %v1364_v19  ;;  %v1870_v19 = vsel %vm1869_vm1, 1, %v5118_v57  ;;  %v1900_v57 = vld [vmem:[%s5436_s15 + $0x30] sm:$0xff] }
 0x229   : > { %4299 = vmatpush3.msra.mxu1 %v5938_v14  ;;  %4257 = vmatprep.subr.mxu0 %v5116_v0 }
 0x22a   : > { %4300 = vmatprep.subr.mxu1 %v5116_v0  ;;  %4258 = vmatpush3.msra.mxu0 %v1371_v32  ;;  %v1874_v32 = vrot.slane %v1870_v19, %v1873_v53 }
 0x22b   : > { %4301 = vmatpush3.msra.mxu1 %v5951_v50  ;;  %4259 = vmatprep.subr.mxu0 %v5116_v0  ;;  %v1907_v50 = vld [vmem:[%s5436_s15 + $0x68] sm:$0xff] }
 0x22c   : > { %4302 = vmatprep.subr.mxu1 %v5116_v0  ;;  %4260 = vmatpush3.msra.mxu0 %v1378_v7  ;;  %vm1875_vm2 = vcmp.eq.s32.totalorder %v1874_v32, 1 }
 0x22d   : > { %4303 = vmatpush3.msra.mxu1 %v5966_v18  ;;  %4261 = vmatprep.subr.mxu0 %v5116_v0  ;;  %v6224_v18 = vand.u32 4294901760, %v1907_v50 }
 0x22e   : > { %4304 = vmatprep.subr.mxu1 %v5116_v0  ;;  %4262 = vmatpush3.msra.mxu0 %v1385_v39  ;;  %v1909_v39 = vld [vmem:[%s5436_s15 + $0x78] sm:$0xff] }
 0x22f   : > { %4305 = vmatpush3.msra.mxu1 %v5974_v59  ;;  %4263 = vmatprep.subr.mxu0 %v5116_v0  ;;  %v1905_v59 = vld [vmem:[%s5436_s15 + $0x58] sm:$0xff]  ;;  %v6243_v51 = vsub.f32 %v1907_v50, %v6224_v18 }
 0x230   : > { %4306 = vmatprep.subr.mxu1 %v5116_v0  ;;  %4264 = vmatpush3.msra.mxu0 %v1392_v10  ;;  %v6220_v10 = vand.u32 4294901760, %v1909_v39 }
 0x231   : > { %4307 = vmatpush3.msra.mxu1 %v5988_v13  ;;  %4265 = vmatprep.subr.mxu0 %v5116_v0  ;;  %v6231_v13 = vand.u32 4294901760, %v1905_v59  ;;  %v2018_v33 = vand.u32 4294901760, %v6243_v51 }
 0x232   : > { %4308 = vmatprep.subr.mxu1 %v5116_v0  ;;  %4266 = vmatpush3.msra.mxu0 %v7103_v5  ;;  %v6237_v56 = vsub.f32 %v1909_v39, %v6220_v10  ;;  %v1898_v39 = vld [vmem:[%s5436_s15 + $0x20] sm:$0xff] }
 0x233   : > { %4309 = vmatpush3.msra.mxu1 %v5999_v44  ;;  %4310 = vmatprep.mubr.msk.f32.mxu1 %vm5117_vm0, %v5116_v0  ;;  %v1903_v44 = vld [vmem:[%s5436_s15 + $0x48] sm:$0xff]  ;;  %v6252_v37 = vsub.f32 %v1905_v59, %v6231_v13  ;;  %v2019_v63 = vsub.f32 %v6243_v51, %v2018_v33  ;;  %v6353_v61 = vand.u32 4294901760, %v1898_v39 }
 0x234   : > { %4267 = vmatprep.subr.mxu0 %v5116_v0  ;;  %4311 = vmatmul.mubr.f32.vlgmr.msra.gmra.mxu1 %v6034_v45  ;;  %v6246_v62 = vand.u32 4294901760, %v1903_v44  ;;  %v2004_v54 = vand.u32 4294901760, %v6237_v56 }
 0x235   : > { %4268 = vmatpush3.msra.mxu0 %v7104_v12  ;;  %4275 = vmatprep.mubr.msk.f32.mxu0 %vm5117_vm0, %v5116_v0  ;;  %v2032_v31 = vand.u32 4294901760, %v6252_v37  ;;  %v2020_v5 = vand.u32 4294901760, %v2019_v63 }
 0x236   : > { %4269 = vmatprep.subr.mxu0 %v5116_v0  ;;  %4348 = vmatprep.subr.mxu1 %v5116_v0  ;;  %v6265_v6 = vsub.f32 %v1903_v44, %v6246_v62  ;;  %v2005_v20 = vsub.f32 %v6237_v56, %v2004_v54  ;;  %v1897_v44 = vld [vmem:[%s5436_s15 + $0x18] sm:$0xff] }
 0x237   : > { %4270 = vmatpush3.msra.mxu0 %v7105_v15  ;;  %4380 = vmatprep.mubr.msk.f32.mxu1 %vm5117_vm0, %v5116_v0  ;;  %v2033_v12 = vsub.f32 %v6252_v37, %v2032_v31 }
 0x238   : > { %4271 = vmatprep.subr.mxu0 %v5116_v0  ;;  %v2006_v49 = vand.u32 4294901760, %v2005_v20  ;;  %v2046_v15 = vand.u32 4294901760, %v6265_v6 }
 0x239   : > { %4272 = vmatpush3.msra.mxu0 %v7106_v16 }
 0x23a   : > { %4273 = vmatprep.subr.mxu0 %v5116_v0  ;;  %4349 = vmatpush3.msra.mxu1 %v2006_v49  ;;  %v6361_v49 = vand.u32 4294901760, %v1897_v44 }
 0x23b   : > { %4274 = vmatpush3.msra.mxu0 %v7107_v17  ;;  %4350 = vmatprep.subr.mxu1 %v5116_v0  ;;  %v2040_v17 = vsub.f32 %v6260_v36, %v2039_v38 }
 0x23c   : > { %4276 = vmatmul.mubr.f32.vlgmr.msra.gmra.mxu0 %v6034_v45  ;;  %4313 = vmatprep.subr.mxu0 %v5116_v0  ;;  %v1906_v45 = vld [vmem:[%s5436_s15 + $0x60] sm:$0xff] }
 0x23d   : > { %4345 = vmatprep.mubr.msk.f32.mxu0 %vm5117_vm0, %v5116_v0  ;;  %v6229_v8 = vand.u32 4294901760, %v1906_v45  ;;  %4314 = vmatpush3.msra.mxu0 %v6220_v10 }
 0x23e   : > { %4315 = vmatprep.subr.mxu0 %v5116_v0  ;;  %4351 = vmatpush3.msra.mxu1 %v2013_v21  ;;  %v1896_v21 = vld [vmem:[%s5436_s15 + $0x10] sm:$0xff] }
 0x23f   : > { %v6249_v3 = vsub.f32 %v1906_v45, %v6229_v8  ;;  %4316 = vmatpush3.msra.mxu0 %v6222_v11  ;;  %4352 = vmatprep.subr.mxu1 %v5116_v0 }
 0x240   : > { %4317 = vmatprep.subr.mxu0 %v5116_v0  ;;  %4353 = vmatpush3.msra.mxu1 %v2020_v5  ;;  %v1894_v5 = vld [vmem:[%s5436_s15] sm:$0xff] }
 0x241   : > { %v2025_v4 = vand.u32 4294901760, %v6249_v3  ;;  %4318 = vmatpush3.msra.mxu0 %v6224_v18  ;;  %4354 = vmatprep.subr.mxu1 %v5116_v0 }
 0x242   : > { %4319 = vmatprep.subr.mxu0 %v5116_v0 }
 0x243   : > { %v2026_v26 = vsub.f32 %v6249_v3, %v2025_v4  ;;  %4320 = vmatpush3.msra.mxu0 %v6229_v8 }
 0x244   : > { %4321 = vmatprep.subr.mxu0 %v5116_v0 }
 0x245   : > { %4322 = vmatpush3.msra.mxu0 %v6231_v13  ;;  %v2027_v16 = vand.u32 4294901760, %v2026_v26  ;;  %v1895_v26 = vld [vmem:[%s5436_s15 + $0x8] sm:$0xff] }
 0x246   : > { %4323 = vmatprep.subr.mxu0 %v5116_v0 }
 0x247   : > { %4324 = vmatpush3.msra.mxu0 %v6233_v42  ;;  %4355 = vmatpush3.msra.mxu1 %v2027_v16  ;;  %v6370_v16 = vand.u32 4294901760, %v1896_v21 }
 0x248   : > { %4325 = vmatprep.subr.mxu0 %v5116_v0  ;;  %4356 = vmatprep.subr.mxu1 %v5116_v0 }
 0x249   : > { %4326 = vmatpush3.msra.mxu0 %v6246_v62 }
 0x24a   : > { %4327 = vmatprep.subr.mxu0 %v5116_v0 }
 0x2b2   : > { %v1466_v22 = vpop.f32.mrf.mxu1 }
 0x2b4   : > { %v4172_v23 = vpop.f32.mrf.mxu1 }
 0x2b5   : > { %v2047_v23 = vsub.f32 %v6265_v6, %v2046_v15 }
 0x2ba   : > { %v1315_v24 = vpop.f32.mrf.mxu0 }
 0x2bb   : > { %v1467_v47 = vadd.f32 %v1466_v22, %v1315_v24  ;;  %v2034_v22 = vand.u32 4294901760, %v2033_v12  ;;  %v2041_v24 = vand.u32 4294901760, %v2040_v17  ;;  %v6368_v12 = vsub.f32 %v1898_v39, %v6353_v61 }
 0x2bc   : > { %v4137_v27 = vpop.f32.mrf.mxu0  ;;  %v6372_v17 = vand.u32 4294901760, %v1895_v26 }
 0x2bd   : > { %4357 = vmatpush3.msra.mxu1 %v2034_v22  ;;  %v2048_v27 = vand.u32 4294901760, %v2047_v23  ;;  %v6375_v22 = vand.u32 4294901760, %v1894_v5 }
 0x2be   : > { %4358 = vmatprep.subr.mxu1 %v5116_v0 }
 0x2bf   : > { %4359 = vmatpush3.msra.mxu1 %v2041_v24 }
 0x2c0   : > { %4360 = vmatprep.subr.mxu1 %v5116_v0 }
 0x2c1   : > { %4361 = vmatpush3.msra.mxu1 %v2048_v27  ;;  %v6381_v27 = vsub.f32 %v1897_v44, %v6361_v49 }
 0x2c2   : > { %4362 = vmatprep.subr.mxu1 %v5116_v0 }
 0x2d2   : > { %v1659_v28 = vpop.f32.mrf.mxu1 }
 0x2d4   : > { %v4242_v29 = vpop.f32.mrf.mxu1 }
 0x2db   : > { %v1570_v30 = vpop.f32.mrf.mxu0 }
 0x2dc   : > { %v1571_v55 = vadd.f32 %v1570_v30, %v1467_v47  ;;  %v1901_v47 = vld [vmem:[%s5436_s15 + $0x38] sm:$0xff] }
 0x2dd   : > { %v4207_v34 = vpop.f32.mrf.mxu0 }
 0x2de   : > { %v1660_v52 = vadd.f32 %v1659_v28, %v1571_v55  ;;  %v6319_v55 = vand.u32 4294901760, %v1901_v47 }
 0x2e0   : > { %v6326_v32 = vsub.f32 %v1901_v47, %v6319_v55 }
 0x2f4   : > { %v1865_v46 = vpop.f32.mrf.mxu1 }
 0x2f6   : > { %v4312_v48 = vpop.f32.mrf.mxu1 }
 0x2fc   : > { %v1778_v58 = vpop.f32.mrf.mxu0 }
 0x2fd   : > { %v1779_v60 = vadd.f32 %v1778_v58, %v1660_v52  ;;  %v6328_v52 = vand.u32 4294901760, %v1900_v57  ;;  %v1899_v58 = vld [vmem:[%s5436_s15 + $0x28] sm:$0xff] }
 0x2fe   : > { %v4277_v7 = vpop.f32.mrf.mxu0 }
 0x2ff   : > { %v1866_v9 = vadd.f32 %v1865_v46, %v1779_v60  ;;  %v6313_v46 = vand.u32 4294901760, %v1902_v35  ;;  %v2060_v7 = vand.u32 4294901760, %v6326_v32 }
 0x301   : > { %v6214_v14 = vsel %vm1875_vm2, -inf, %v1866_v9  ;;  %v6317_v48 = vsub.f32 %v1902_v35, %v6313_v46  ;;  %4328 = vmatpush3.msra.mxu0 %v6313_v46  ;;  %v6338_v9 = vsub.f32 %v1900_v57, %v6328_v52  ;;  %v2061_v50 = vsub.f32 %v6326_v32, %v2060_v7 }
 0x302   : > { %1877 = vmax.xlane.f32.xlu0 %v6214_v14  ;;  %4329 = vmatprep.subr.mxu0 %v5116_v0  ;;  %v6393_v35 = vsub.f32 %v1894_v5, %v6375_v22  ;;  %v2088_v57 = vand.u32 4294901760, %v6381_v27 }
 0x303   : > { %v2053_v19 = vand.u32 4294901760, %v6317_v48  ;;  %4330 = vmatpush3.msra.mxu0 %v6319_v55  ;;  %v2067_v45 = vand.u32 4294901760, %v6338_v9  ;;  %v2062_v20 = vand.u32 4294901760, %v2061_v50 }
 0x304   : > { %4331 = vmatprep.subr.mxu0 %v5116_v0  ;;  %v2089_v50 = vsub.f32 %v6381_v27, %v2088_v57 }
 0x305   : > { %v2054_v60 = vsub.f32 %v6317_v48, %v2053_v19  ;;  %4332 = vmatpush3.msra.mxu0 %v6328_v52  ;;  %v2068_v25 = vsub.f32 %v6338_v9, %v2067_v45 }
 0x306   : > { %4333 = vmatprep.subr.mxu0 %v5116_v0 }
 0x307   : > { %v2055_v41 = vand.u32 4294901760, %v2054_v60  ;;  %v2069_v23 = vand.u32 4294901760, %v2068_v25 }
 0x309   : > { %4363 = vmatpush3.msra.mxu1 %v2055_v41  ;;  %v2109_v41 = vand.u32 4294901760, %v6393_v35 }
 0x30a   : > { %4364 = vmatprep.subr.mxu1 %v5116_v0 }
 0x30b   : > { %4365 = vmatpush3.msra.mxu1 %v2062_v20  ;;  %v2110_v5 = vsub.f32 %v6393_v35, %v2109_v41 }
 0x30c   : > { %4366 = vmatprep.subr.mxu1 %v5116_v0 }
 0x30d   : > { %4367 = vmatpush3.msra.mxu1 %v2069_v23 }
 0x30e   : > { %4368 = vmatprep.subr.mxu1 %v5116_v0 }
 0x38b   : > { %v1878_v28 = vpop.xlane.xlu0 %1877 }
 0x38c   : > { %v1879_v29 = vsub.f32 %v6214_v14, %v1878_v28  ;;  %v6340_v14 = vand.u32 4294901760, %v1899_v58  ;;  %v2081_v28 = vand.u32 4294901760, %v6368_v12 }
 0x38e   : > { %v1880_v30 = vmul.f32 1.442695, %v1879_v29  ;;  %v6350_v59 = vsub.f32 %v1899_v58, %v6340_v14  ;;  %4334 = vmatpush3.msra.mxu0 %v6340_v14  ;;  %v6387_v29 = vsub.f32 %v1896_v21, %v6370_v16  ;;  %v2082_v58 = vsub.f32 %v6368_v12, %v2081_v28 }
 0x38f   : > { %4335 = vmatprep.subr.mxu0 %v5116_v0  ;;  %v2090_v21 = vand.u32 4294901760, %v2089_v50 }
 0x390   : > { %4825 = vpow2.f32 %v1880_v30  ;;  %v2074_v63 = vand.u32 4294901760, %v6350_v59  ;;  %4336 = vmatpush3.msra.mxu0 %v6353_v61  ;;  %v6390_v30 = vsub.f32 %v1895_v26, %v6372_v17  ;;  %v2095_v60 = vand.u32 4294901760, %v6387_v29 }
 0x391   : > { %4337 = vmatprep.subr.mxu0 %v5116_v0  ;;  %v2083_v44 = vand.u32 4294901760, %v2082_v58 }
 0x392   : > { %v2075_v24 = vsub.f32 %v6350_v59, %v2074_v63  ;;  %4338 = vmatpush3.msra.mxu0 %v6361_v49  ;;  %v2102_v39 = vand.u32 4294901760, %v6390_v30  ;;  %v2096_v20 = vsub.f32 %v6387_v29, %v2095_v60 }
 0x393   : > { %4339 = vmatprep.subr.mxu0 %v5116_v0 }
 0x394   : > { %v2076_v47 = vand.u32 4294901760, %v2075_v24  ;;  %4340 = vmatpush3.msra.mxu0 %v6370_v16  ;;  %v2103_v25 = vsub.f32 %v6390_v30, %v2102_v39  ;;  %v2097_v26 = vand.u32 4294901760, %v2096_v20  ;;  %v2111_v24 = vand.u32 4294901760, %v2110_v5 }
 0x395   : > { %4341 = vmatprep.subr.mxu0 %v5116_v0 }
 0x396   : > { %4369 = vmatpush3.msra.mxu1 %v2076_v47  ;;  %4342 = vmatpush3.msra.mxu0 %v6372_v17  ;;  %v2104_v23 = vand.u32 4294901760, %v2103_v25  ;;  %v1886_v47 = vsel %vm1885_vm3, %v6206_v40, 0.0 }
 0x397   : > { %4370 = vmatprep.subr.mxu1 %v5116_v0  ;;  %4343 = vmatprep.subr.mxu0 %v5116_v0 }
 0x398   : > { %4371 = vmatpush3.msra.mxu1 %v2083_v44  ;;  %4344 = vmatpush3.msra.mxu0 %v6375_v22 }
 0x399   : > { %4372 = vmatprep.subr.mxu1 %v5116_v0  ;;  %4383 = vmatprep.subr.mxu0 %v5116_v0 }
 0x39a   : > { %4373 = vmatpush3.msra.mxu1 %v2090_v21  ;;  %1887 = vadd.xlane.f32.xlu1 %v1886_v47  ;;  %v2561_v47 = vld [vmem:[#allocation11 + $0x28] sm:$0xff] }
 0x39b   : > { %4374 = vmatprep.subr.mxu1 %v5116_v0 }
 0x39c   : > { %4375 = vmatpush3.msra.mxu1 %v2097_v26  ;;  %v2562_v26 = vld [vmem:[#allocation11 + $0x30] sm:$0xff] }
 0x39d   : > { %v6309_v34 = vpop.eup %4825  ;;  %4376 = vmatprep.subr.mxu1 %v5116_v0 }
 0x39e   : > { %1882 = vadd.xlane.f32.xlu0 %v6309_v34  ;;  %4377 = vmatpush3.msra.mxu1 %v2104_v23 }
 0x39f   : > { %4378 = vmatprep.subr.mxu1 %v5116_v0 }
 0x3a0   : > { %4379 = vmatpush3.msra.mxu1 %v2111_v24  ;;  %v6698_v24 = vand.u32 4294901760, %v2562_v26 }
 0x3a1   : > { %4418 = vmatprep.subr.mxu1 %v5116_v0 }
 0x427   : > { %v1883_v58 = vpop.xlane.xlu0 %1882 }
 0x428   : > { %4827 = vrcp.f32 %v1883_v58 }
 0x435   : > { %v4828_v50 = vpop.eup %4827 }
 0x436   : > { %v1892_v44 = vmul.f32 %v4828_v50, %v6309_v34 }
 0x438   : > { %v6431_v20 = vand.u32 4294901760, %v1892_v44  ;;  %1893 = vst [vmem:[%s539_s20] sm:$0xff] %v1892_v44 }
 0x43a   : > { %4381 = vmatmul.mubr.f32.vlgmr.msra.gmra.mxu1 %v6431_v20  ;;  %v6438_v25 = vsub.f32 %v1892_v44, %v6431_v20  ;;  %v6705_v44 = vsub.f32 %v2562_v26, %v6698_v24 }
 0x43b   : > { %4419 = vmatpush3.msra.mxu1 %v6220_v10  ;;  %4450 = vmatprep.mubr.msk.f32.mxu1 %vm5117_vm0, %v5116_v0 }
 0x43c   : > { %4420 = vmatprep.subr.mxu1 %v5116_v0  ;;  %v1993_v40 = vand.u32 4294901760, %v6438_v25 }
 0x43d   : > { %4421 = vmatpush3.msra.mxu1 %v6222_v11 }
 0x43e   : > { %4422 = vmatprep.subr.mxu1 %v5116_v0  ;;  %v1994_v34 = vsub.f32 %v6438_v25, %v1993_v40 }
 0x43f   : > { %4423 = vmatpush3.msra.mxu1 %v6224_v18 }
 0x440   : > { %4424 = vmatprep.subr.mxu1 %v5116_v0  ;;  %v1995_v21 = vand.u32 4294901760, %v1994_v34  ;;  %v7064_v34 = vand.u32 4294901760, %v6705_v44 }
 0x441   : > { %4425 = vmatpush3.msra.mxu1 %v6229_v8 }
 0x442   : > { %4426 = vmatprep.subr.mxu1 %v5116_v0  ;;  %4346 = vmatmul.mubr.f32.vlgmr.msra.gmra.mxu0 %v1995_v21 }
 0x443   : > { %4384 = vmatpush3.msra.mxu0 %v6237_v56  ;;  %4427 = vmatpush3.msra.mxu1 %v6231_v13  ;;  %v2568_v56 = vld [vmem:[#allocation11 + $0x60] sm:$0xff] }
 0x444   : > { %4385 = vmatprep.subr.mxu0 %v5116_v0  ;;  %4428 = vmatprep.subr.mxu1 %v5116_v0 }
 0x445   : > { %4386 = vmatpush3.msra.mxu0 %v6240_v1  ;;  %4429 = vmatpush3.msra.mxu1 %v6233_v42  ;;  %v2567_v1 = vld [vmem:[#allocation11 + $0x58] sm:$0xff] }
 0x446   : > { %4387 = vmatprep.subr.mxu0 %v5116_v0  ;;  %4430 = vmatprep.subr.mxu1 %v5116_v0 }
 0x447   : > { %4388 = vmatpush3.msra.mxu0 %v6243_v51  ;;  %4431 = vmatpush3.msra.mxu1 %v6246_v62 }
 0x448   : > { %4389 = vmatprep.subr.mxu0 %v5116_v0  ;;  %4432 = vmatprep.subr.mxu1 %v5116_v0 }
 0x449   : > { %4390 = vmatpush3.msra.mxu0 %v6249_v3  ;;  %4433 = vmatpush3.msra.mxu1 %v6313_v46  ;;  %v6613_v3 = vand.u32 4294901760, %v2567_v1 }
 0x44a   : > { %4391 = vmatprep.subr.mxu0 %v5116_v0  ;;  %4434 = vmatprep.subr.mxu1 %v5116_v0 }
 0x44b   : > { %4392 = vmatpush3.msra.mxu0 %v6252_v37  ;;  %4435 = vmatpush3.msra.mxu1 %v6319_v55  ;;  %v2566_v37 = vld [vmem:[#allocation11 + $0x50] sm:$0xff] }
 0x44c   : > { %4393 = vmatprep.subr.mxu0 %v5116_v0  ;;  %4436 = vmatprep.subr.mxu1 %v5116_v0 }
 0x44d   : > { %4394 = vmatpush3.msra.mxu0 %v6260_v36  ;;  %4437 = vmatpush3.msra.mxu1 %v6328_v52 }
 0x44e   : > { %4395 = vmatprep.subr.mxu0 %v5116_v0  ;;  %4438 = vmatprep.subr.mxu1 %v5116_v0 }
 0x44f   : > { %4396 = vmatpush3.msra.mxu0 %v6265_v6  ;;  %4439 = vmatpush3.msra.mxu1 %v6340_v14 }
 0x450   : > { %4397 = vmatprep.subr.mxu0 %v5116_v0  ;;  %4440 = vmatprep.subr.mxu1 %v5116_v0 }
 0x451   : > { %4398 = vmatpush3.msra.mxu0 %v6317_v48  ;;  %4441 = vmatpush3.msra.mxu1 %v6353_v61 }
 0x452   : > { %4399 = vmatprep.subr.mxu0 %v5116_v0  ;;  %4442 = vmatprep.subr.mxu1 %v5116_v0 }
 0x453   : > { %4400 = vmatpush3.msra.mxu0 %v6326_v32  ;;  %4443 = vmatpush3.msra.mxu1 %v6361_v49 }
 0x454   : > { %4401 = vmatprep.subr.mxu0 %v5116_v0  ;;  %4444 = vmatprep.subr.mxu1 %v5116_v0 }
 0x455   : > { %4402 = vmatpush3.msra.mxu0 %v6338_v9  ;;  %4445 = vmatpush3.msra.mxu1 %v6370_v16 }
 0x456   : > { %4403 = vmatprep.subr.mxu0 %v5116_v0  ;;  %4446 = vmatprep.subr.mxu1 %v5116_v0 }
 0x457   : > { %4404 = vmatpush3.msra.mxu0 %v6350_v59  ;;  %4447 = vmatpush3.msra.mxu1 %v6372_v17 }
 0x458   : > { %4405 = vmatprep.subr.mxu0 %v5116_v0  ;;  %4448 = vmatprep.subr.mxu1 %v5116_v0 }
 0x459   : > { %4406 = vmatpush3.msra.mxu0 %v6368_v12  ;;  %4449 = vmatpush3.msra.mxu1 %v6375_v22 }
 0x45a   : > { %4407 = vmatprep.subr.mxu0 %v5116_v0  ;;  %4451 = vmatmul.mubr.f32.vlgmr.msra.gmra.mxu1 %v1993_v40 }
 0x45b   : > { %4488 = vmatprep.subr.mxu1 %v5116_v0  ;;  %4408 = vmatpush3.msra.mxu0 %v6381_v27 }
 0x45c   : > { %4489 = vmatpush3.msra.mxu1 %v6220_v10  ;;  %4409 = vmatprep.subr.mxu0 %v5116_v0  ;;  %v2571_v10 = vld [vmem:[#allocation11 + $0x78] sm:$0xff] }
 0x45d   : > { %4490 = vmatprep.subr.mxu1 %v5116_v0  ;;  %4410 = vmatpush3.msra.mxu0 %v6387_v29 }
 0x45e   : > { %4491 = vmatpush3.msra.mxu1 %v6222_v11  ;;  %4411 = vmatprep.subr.mxu0 %v5116_v0  ;;  %v6601_v11 = vand.u32 4294901760, %v2571_v10 }
 0x45f   : > { %4492 = vmatprep.subr.mxu1 %v5116_v0  ;;  %4412 = vmatpush3.msra.mxu0 %v6390_v30 }
 0x460   : > { %4493 = vmatpush3.msra.mxu1 %v6224_v18  ;;  %4413 = vmatprep.subr.mxu0 %v5116_v0  ;;  %v2570_v18 = vld [vmem:[#allocation11 + $0x70] sm:$0xff] }
 0x461   : > { %4494 = vmatprep.subr.mxu1 %v5116_v0  ;;  %4414 = vmatpush3.msra.mxu0 %v6393_v35 }
 0x462   : > { %4415 = vmatprep.mubr.msk.f32.mxu0 %vm5117_vm0, %v5116_v0  ;;  %4495 = vmatpush3.msra.mxu1 %v6229_v8  ;;  %v6604_v8 = vsub.f32 %v2571_v10, %v6601_v11 }
 0x463   : > { %4416 = vmatmul.mubr.f32.vlgmr.msra.gmra.mxu0 %v6438_v25  ;;  %4453 = vmatprep.subr.mxu0 %v5116_v0  ;;  %v2560_v25 = vld [vmem:[#allocation11 + $0x20] sm:$0xff] }
 0x464   : > { %4496 = vmatprep.subr.mxu1 %v5116_v0  ;;  %4454 = vmatpush3.msra.mxu0 %v2004_v54  ;;  %v2565_v54 = vld [vmem:[#allocation11 + $0x48] sm:$0xff]  ;;  %v6719_v10 = vand.u32 4294901760, %v2560_v25 }
 0x465   : > { %4497 = vmatpush3.msra.mxu1 %v6231_v13  ;;  %4455 = vmatprep.subr.mxu0 %v5116_v0  ;;  %v6606_v13 = vand.u32 4294901760, %v2570_v18 }
 0x466   : > { %4498 = vmatprep.subr.mxu1 %v5116_v0  ;;  %4456 = vmatpush3.msra.mxu0 %v2011_v2  ;;  %v2564_v2 = vld [vmem:[#allocation11 + $0x40] sm:$0xff] }
 0x467   : > { %4499 = vmatpush3.msra.mxu1 %v6233_v42  ;;  %4457 = vmatprep.subr.mxu0 %v5116_v0  ;;  %v2569_v42 = vld [vmem:[#allocation11 + $0x68] sm:$0xff]  ;;  %v6618_v36 = vsub.f32 %v2570_v18, %v6606_v13  ;;  %v2559_v18 = vld [vmem:[#allocation11 + $0x18] sm:$0xff] }
 0x468   : > { %4500 = vmatprep.subr.mxu1 %v5116_v0  ;;  %4458 = vmatpush3.msra.mxu0 %v2018_v33  ;;  %v6609_v51 = vand.u32 4294901760, %v2569_v42  ;;  %v2673_v33 = vand.u32 4294901760, %v6604_v8 }
 0x469   : > { %4501 = vmatpush3.msra.mxu1 %v6246_v62  ;;  %4459 = vmatprep.subr.mxu0 %v5116_v0  ;;  %v6611_v62 = vand.u32 4294901760, %v2568_v56  ;;  %v2680_v48 = vand.u32 4294901760, %v6618_v36 }
 0x46a   : > { %4502 = vmatprep.subr.mxu1 %v5116_v0  ;;  %4460 = vmatpush3.msra.mxu0 %v2025_v4  ;;  %v6621_v4 = vand.u32 4294901760, %v2566_v37  ;;  %v6624_v6 = vsub.f32 %v2569_v42, %v6609_v51 }
 0x46b   : > { %4503 = vmatpush3.msra.mxu1 %v6313_v46  ;;  %4461 = vmatprep.subr.mxu0 %v5116_v0  ;;  %v2674_v46 = vsub.f32 %v6604_v8, %v2673_v33 }
 0x46c   : > { %4504 = vmatprep.subr.mxu1 %v5116_v0  ;;  %4462 = vmatpush3.msra.mxu0 %v2032_v31  ;;  %v6627_v31 = vsub.f32 %v2568_v56, %v6611_v62  ;;  %v2687_v32 = vand.u32 4294901760, %v6624_v6  ;;  %v2737_v56 = vsub.f32 %v6705_v44, %v7064_v34 }
 0x46d   : > { %4505 = vmatpush3.msra.mxu1 %v6319_v55  ;;  %4463 = vmatprep.subr.mxu0 %v5116_v0  ;;  %v6640_v55 = vsub.f32 %v2566_v37, %v6621_v4  ;;  %v6729_v37 = vsub.f32 %v2560_v25, %v6719_v10 }
 0x46e   : > { %4506 = vmatprep.subr.mxu1 %v5116_v0  ;;  %4464 = vmatpush3.msra.mxu0 %v2039_v38  ;;  %v6630_v38 = vsub.f32 %v2567_v1, %v6613_v3 }
 0x46f   : > { %4507 = vmatpush3.msra.mxu1 %v6328_v52  ;;  %4465 = vmatprep.subr.mxu0 %v5116_v0  ;;  %v2694_v52 = vand.u32 4294901760, %v6627_v31  ;;  %v2708_v59 = vand.u32 4294901760, %v6640_v55 }
 0x470   : > { %4508 = vmatprep.subr.mxu1 %v5116_v0  ;;  %4466 = vmatpush3.msra.mxu0 %v2046_v15  ;;  %v6633_v15 = vand.u32 4294901760, %v2565_v54 }
 0x471   : > { %4509 = vmatpush3.msra.mxu1 %v6340_v14  ;;  %4467 = vmatprep.subr.mxu0 %v5116_v0  ;;  %v2675_v14 = vand.u32 4294901760, %v2674_v46  ;;  %v2738_v46 = vand.u32 4294901760, %v2737_v56 }
 0x472   : > { %4510 = vmatprep.subr.mxu1 %v5116_v0  ;;  %4468 = vmatpush3.msra.mxu0 %v2053_v19  ;;  %v6643_v19 = vand.u32 4294901760, %v2564_v2  ;;  %v6649_v9 = vsub.f32 %v2565_v54, %v6633_v15  ;;  %v6733_v54 = vand.u32 4294901760, %v2559_v18 }
 0x473   : > { %4511 = vmatpush3.msra.mxu1 %v6353_v61  ;;  %4469 = vmatprep.subr.mxu0 %v5116_v0 }
 0x474   : > { %4512 = vmatprep.subr.mxu1 %v5116_v0  ;;  %4470 = vmatpush3.msra.mxu0 %v2060_v7  ;;  %v2701_v7 = vand.u32 4294901760, %v6630_v38  ;;  %v6658_v61 = vsub.f32 %v2564_v2, %v6643_v19  ;;  %v2558_v2 = vld [vmem:[#allocation11 + $0x10] sm:$0xff] }
 0x475   : > { %4513 = vmatpush3.msra.mxu1 %v6361_v49  ;;  %4471 = vmatprep.subr.mxu0 %v5116_v0  ;;  %v2695_v49 = vsub.f32 %v6627_v31, %v2694_v52 }
 0x476   : > { %4514 = vmatprep.subr.mxu1 %v5116_v0  ;;  %4472 = vmatpush3.msra.mxu0 %v2067_v45  ;;  %v2681_v45 = vsub.f32 %v6618_v36, %v2680_v48  ;;  %v2722_v29 = vand.u32 4294901760, %v6658_v61 }
 0x477   : > { %4515 = vmatpush3.msra.mxu1 %v6370_v16  ;;  %4473 = vmatprep.subr.mxu0 %v5116_v0  ;;  %v2702_v16 = vsub.f32 %v6630_v38, %v2701_v7  ;;  %v2696_v27 = vand.u32 4294901760, %v2695_v49  ;;  %v6744_v49 = vsub.f32 %v2559_v18, %v6733_v54 }
 0x478   : > { %4516 = vmatprep.subr.mxu1 %v5116_v0  ;;  %4474 = vmatpush3.msra.mxu0 %v2074_v63  ;;  %v2688_v63 = vsub.f32 %v6624_v6, %v2687_v32  ;;  %v2682_v12 = vand.u32 4294901760, %v2681_v45  ;;  %v7062_v45 = vand.u32 4294901760, %v6729_v37 }
 0x479   : > { %4517 = vmatpush3.msra.mxu1 %v6372_v17  ;;  %4475 = vmatprep.subr.mxu0 %v5116_v0  ;;  %v2715_v17 = vand.u32 4294901760, %v6649_v9  ;;  %v2703_v30 = vand.u32 4294901760, %v2702_v16 }
 0x47a   : > { %4518 = vmatprep.subr.mxu1 %v5116_v0  ;;  %4476 = vmatpush3.msra.mxu0 %v2081_v28  ;;  %v2709_v28 = vsub.f32 %v6640_v55, %v2708_v59 }
 0x47b   : > { %4519 = vmatpush3.msra.mxu1 %v6375_v22  ;;  %4520 = vmatprep.mubr.msk.f32.mxu1 %vm5117_vm0, %v5116_v0  ;;  %v2689_v22 = vand.u32 4294901760, %v2688_v63  ;;  %v2716_v35 = vsub.f32 %v6649_v9, %v2715_v17  ;;  %v6740_v63 = vand.u32 4294901760, %v2558_v2 }
 0x47c   : > { %4477 = vmatprep.subr.mxu0 %v5116_v0  ;;  %4521 = vmatmul.mubr.f32.vlgmr.msra.gmra.mxu1 %v6431_v20 }
 0x47d   : > { %4478 = vmatpush3.msra.mxu0 %v2088_v57  ;;  %4485 = vmatprep.mubr.msk.f32.mxu0 %vm5117_vm0, %v5116_v0  ;;  %v2563_v57 = vld [vmem:[#allocation11 + $0x38] sm:$0xff]  ;;  %v2717_v5 = vand.u32 4294901760, %v2716_v35  ;;  %v2556_v35 = vld [vmem:[#allocation11] sm:$0xff] }
 0x47e   : > { %4479 = vmatprep.subr.mxu0 %v5116_v0  ;;  %4558 = vmatprep.subr.mxu1 %v5116_v0  ;;  %v6763_v26 = vand.u32 4294901760, %v2556_v35 }
 0x47f   : > { %4480 = vmatpush3.msra.mxu0 %v2095_v60  ;;  %4590 = vmatprep.mubr.msk.f32.mxu1 %vm5117_vm0, %v5116_v0  ;;  %v2710_v60 = vand.u32 4294901760, %v2709_v28 }
 0x480   : > { %4481 = vmatprep.subr.mxu0 %v5116_v0  ;;  %4559 = vmatpush3.msra.mxu1 %v2675_v14  ;;  %v6776_v25 = vsub.f32 %v2556_v35, %v6763_v26 }
 0x481   : > { %4482 = vmatpush3.msra.mxu0 %v2102_v39  ;;  %4560 = vmatprep.subr.mxu1 %v5116_v0  ;;  %v2723_v39 = vsub.f32 %v6658_v61, %v2722_v29 }
 0x482   : > { %4483 = vmatprep.subr.mxu0 %v5116_v0  ;;  %4561 = vmatpush3.msra.mxu1 %v2682_v12  ;;  %v2557_v12 = vld [vmem:[#allocation11 + $0x8] sm:$0xff]  ;;  %v7058_v56 = vand.u32 4294901760, %v6776_v25 }
 0x483   : > { %4484 = vmatpush3.msra.mxu0 %v2109_v41  ;;  %4562 = vmatprep.subr.mxu1 %v5116_v0  ;;  %v6690_v41 = vand.u32 4294901760, %v2563_v57  ;;  %v2724_v58 = vand.u32 4294901760, %v2723_v39  ;;  %v6753_v28 = vand.u32 4294901760, %v2557_v12 }
 0x484   : > { %4486 = vmatmul.mubr.f32.vlgmr.msra.gmra.mxu0 %v6431_v20  ;;  %4523 = vmatprep.subr.mxu0 %v5116_v0  ;;  %v6707_v20 = vand.u32 4294901760, %v2561_v47 }
 0x485   : > { %4555 = vmatprep.mubr.msk.f32.mxu0 %vm5117_vm0, %v5116_v0  ;;  %4524 = vmatpush3.msra.mxu0 %v6601_v11  ;;  %v6696_v23 = vsub.f32 %v2563_v57, %v6690_v41  ;;  %v6761_v39 = vsub.f32 %v2557_v12, %v6753_v28 }
 0x486   : > { %4525 = vmatprep.subr.mxu0 %v5116_v0  ;;  %4563 = vmatpush3.msra.mxu1 %v2689_v22  ;;  %v6717_v21 = vsub.f32 %v2561_v47, %v6707_v20  ;;  %v2751_v22 = vsub.f32 %v6729_v37, %v7062_v45 }
 0x487   : > { %4526 = vmatpush3.msra.mxu0 %v6606_v13  ;;  %4564 = vmatprep.subr.mxu1 %v5116_v0  ;;  %v7065_v50 = vand.u32 4294901760, %v6696_v23 }
 0x488   : > { %4527 = vmatprep.subr.mxu0 %v5116_v0  ;;  %4565 = vmatpush3.msra.mxu1 %v2696_v27  ;;  %v7063_v1 = vand.u32 4294901760, %v6717_v21  ;;  %v6751_v27 = vsub.f32 %v2558_v2, %v6740_v63  ;;  %v2752_v57 = vand.u32 4294901760, %v2751_v22 }
 0x489   : > { %4528 = vmatpush3.msra.mxu0 %v6609_v51  ;;  %4566 = vmatprep.subr.mxu1 %v5116_v0  ;;  %v2730_v40 = vsub.f32 %v6696_v23, %v7065_v50 }
 0x48a   : > { %4529 = vmatprep.subr.mxu0 %v5116_v0  ;;  %4567 = vmatpush3.msra.mxu1 %v2703_v30  ;;  %v2744_v14 = vsub.f32 %v6717_v21, %v7063_v1  ;;  %v7061_v30 = vand.u32 4294901760, %v6744_v49 }
 0x48b   : > { %4530 = vmatpush3.msra.mxu0 %v6611_v62  ;;  %4568 = vmatprep.subr.mxu1 %v5116_v0  ;;  %v2731_v42 = vand.u32 4294901760, %v2730_v40 }
 0x48c   : > { %4531 = vmatprep.subr.mxu0 %v5116_v0  ;;  %4569 = vmatpush3.msra.mxu1 %v2710_v60  ;;  %v2745_v16 = vand.u32 4294901760, %v2744_v14  ;;  %v7060_v60 = vand.u32 4294901760, %v6751_v27 }
 0x48d   : > { %4532 = vmatpush3.msra.mxu0 %v6613_v3  ;;  %4570 = vmatprep.subr.mxu1 %v5116_v0 }
 0x48e   : > { %4533 = vmatprep.subr.mxu0 %v5116_v0  ;;  %4571 = vmatpush3.msra.mxu1 %v2717_v5  ;;  %v2758_v5 = vsub.f32 %v6744_v49, %v7061_v30  ;;  %v2765_v47 = vsub.f32 %v6751_v27, %v7060_v60 }
 0x48f   : > { %4534 = vmatpush3.msra.mxu0 %v6621_v4  ;;  %4572 = vmatprep.subr.mxu1 %v5116_v0 }
 0x490   : > { %4535 = vmatprep.subr.mxu0 %v5116_v0  ;;  %4573 = vmatpush3.msra.mxu1 %v2724_v58  ;;  %v7059_v58 = vand.u32 4294901760, %v6761_v39  ;;  %v2759_v40 = vand.u32 4294901760, %v2758_v5  ;;  %v2766_v18 = vand.u32 4294901760, %v2765_v47 }
 0x491   : > { %4536 = vmatpush3.msra.mxu0 %v6633_v15  ;;  %4574 = vmatprep.subr.mxu1 %v5116_v0 }
 0x492   : > { %4537 = vmatprep.subr.mxu0 %v5116_v0  ;;  %4575 = vmatpush3.msra.mxu1 %v2731_v42  ;;  %v2772_v42 = vsub.f32 %v6761_v39, %v7059_v58 }
 0x493   : > { %4538 = vmatpush3.msra.mxu0 %v6643_v19  ;;  %4576 = vmatprep.subr.mxu1 %v5116_v0 }
 0x494   : > { %4539 = vmatprep.subr.mxu0 %v5116_v0  ;;  %4577 = vmatpush3.msra.mxu1 %v2738_v46  ;;  %v2773_v2 = vand.u32 4294901760, %v2772_v42  ;;  %v2779_v46 = vsub.f32 %v6776_v25, %v7058_v56  ;;  %v1888_v42 = vpop.xlane.xlu1 %1887 }
 0x495   : > { %4540 = vmatpush3.msra.mxu0 %v6690_v41  ;;  %4578 = vmatprep.subr.mxu1 %v5116_v0  ;;  %v1889_v56 = vsub.f32 128.0, %v1888_v42 }
 0x496   : > { %4541 = vmatprep.subr.mxu0 %v5116_v0  ;;  %4579 = vmatpush3.msra.mxu1 %v2745_v16  ;;  %v2780_v14 = vand.u32 4294901760, %v2779_v46 }
 0x497   : > { %4542 = vmatpush3.msra.mxu0 %v6698_v24  ;;  %4580 = vmatprep.subr.mxu1 %v5116_v0  ;;  %4829 = vrsqrt.f32 %v1889_v56 }
 0x498   : > { %4543 = vmatprep.subr.mxu0 %v5116_v0  ;;  %4581 = vmatpush3.msra.mxu1 %v2752_v57 }
 0x499   : > { %4544 = vmatpush3.msra.mxu0 %v6707_v20  ;;  %4582 = vmatprep.subr.mxu1 %v5116_v0 }
 0x49a   : > { %4545 = vmatprep.subr.mxu0 %v5116_v0  ;;  %4583 = vmatpush3.msra.mxu1 %v2759_v40 }
 0x49b   : > { %4546 = vmatpush3.msra.mxu0 %v6719_v10  ;;  %4584 = vmatprep.subr.mxu1 %v5116_v0 }
 0x49c   : > { %4547 = vmatprep.subr.mxu0 %v5116_v0  ;;  %4585 = vmatpush3.msra.mxu1 %v2766_v18 }
 0x49d   : > { %4548 = vmatpush3.msra.mxu0 %v6733_v54  ;;  %4586 = vmatprep.subr.mxu1 %v5116_v0 }
 0x49e   : > { %4549 = vmatprep.subr.mxu0 %v5116_v0  ;;  %4587 = vmatpush3.msra.mxu1 %v2773_v2 }
 0x49f   : > { %4550 = vmatpush3.msra.mxu0 %v6740_v63  ;;  %4588 = vmatprep.subr.mxu1 %v5116_v0 }
 0x4a0   : > { %4551 = vmatprep.subr.mxu0 %v5116_v0  ;;  %4589 = vmatpush3.msra.mxu1 %v2780_v14 }
 0x4a1   : > { %4552 = vmatpush3.msra.mxu0 %v6753_v28  ;;  %4628 = vmatprep.subr.mxu1 %v5116_v0 }
 0x4a2   : > { %4553 = vmatprep.subr.mxu0 %v5116_v0 }
 0x4a3   : > { %4554 = vmatpush3.msra.mxu0 %v6763_v26 }
 0x4a4   : > { %4593 = vmatprep.subr.mxu0 %v5116_v0  ;;  %v4830_v60 = vpop.eup %4829 }
 0x4a5   : > { %v1891_v30 = vmul.f32 %v4830_v60, %v1889_v56 }
 0x4fa   : > { %v2148_v12 = vpop.f32.mrf.mxu1 }
 0x4fc   : > { %v4382_v16 = vpop.f32.mrf.mxu1 }
 0x4fd   : > { %v2554_v16 = vrot.slane %v1891_v30, %v1873_v53 }
 0x502   : > { %v1997_v22 = vpop.f32.mrf.mxu0 }
 0x503   : > { %v2149_v58 = vadd.f32 %v2148_v12, %v1997_v22 }
 0x504   : > { %v4347_v35 = vpop.f32.mrf.mxu0 }
 0x51a   : > { %v2341_v57 = vpop.f32.mrf.mxu1 }
 0x51c   : > { %v4452_v5 = vpop.f32.mrf.mxu1 }
 0x523   : > { %v2252_v47 = vpop.f32.mrf.mxu0 }
 0x524   : > { %v2253_v2 = vadd.f32 %v2252_v47, %v2149_v58 }
 0x525   : > { %v4417_v40 = vpop.f32.mrf.mxu0 }
 0x526   : > { %v2342_v14 = vadd.f32 %v2341_v57, %v2253_v2 }
 0x53c   : > { %v2547_v18 = vpop.f32.mrf.mxu1 }
 0x53e   : > { %v4522_v46 = vpop.f32.mrf.mxu1 }
 0x544   : > { %v2460_v45 = vpop.f32.mrf.mxu0 }
 0x545   : > { %v2461_v1 = vadd.f32 %v2460_v45, %v2342_v14 }
 0x546   : > { %v4487_v34 = vpop.f32.mrf.mxu0 }
 0x547   : > { %v2548_v35 = vadd.f32 %v2547_v18, %v2461_v1 }
 0x549   : > { %v2555_v5 = vmul.f32 %v2554_v16, %v2548_v35 }
 0x54b   : > { %v6795_v50 = vand.u32 4294901760, %v2555_v5 }
 0x54d   : > { %v6798_v40 = vsub.f32 %v2555_v5, %v6795_v50  ;;  %4591 = vmatmul.mubr.f32.vlgmr.msra.gmra.mxu1 %v6795_v50 }
 0x54e   : > { %4629 = vmatpush3.msra.mxu1 %v6601_v11  ;;  %4660 = vmatprep.mubr.msk.f32.mxu1 %vm5117_vm0, %v5116_v0 }
 0x54f   : > { %4630 = vmatprep.subr.mxu1 %v5116_v0  ;;  %v2662_v34 = vand.u32 4294901760, %v6798_v40 }
 0x550   : > { %4631 = vmatpush3.msra.mxu1 %v6606_v13 }
 0x551   : > { %4632 = vmatprep.subr.mxu1 %v5116_v0  ;;  %v2663_v43 = vsub.f32 %v6798_v40, %v2662_v34 }
 0x552   : > { %4633 = vmatpush3.msra.mxu1 %v6609_v51 }
 0x553   : > { %4634 = vmatprep.subr.mxu1 %v5116_v0  ;;  %v2664_v53 = vand.u32 4294901760, %v2663_v43 }
 0x554   : > { %4635 = vmatpush3.msra.mxu1 %v6611_v62 }
 0x555   : > { %4636 = vmatprep.subr.mxu1 %v5116_v0  ;;  %4556 = vmatmul.mubr.f32.vlgmr.msra.gmra.mxu0 %v2664_v53 }
 0x556   : > { %4594 = vmatpush3.msra.mxu0 %v6604_v8  ;;  %4637 = vmatpush3.msra.mxu1 %v6613_v3  ;;  %v7109_v8 = vand.u32 4294901760, %v6705_v44 }
 0x557   : > { %4595 = vmatprep.subr.mxu0 %v5116_v0  ;;  %4638 = vmatprep.subr.mxu1 %v5116_v0 }
 0x558   : > { %4596 = vmatpush3.msra.mxu0 %v6618_v36  ;;  %4639 = vmatpush3.msra.mxu1 %v6621_v4  ;;  %v7116_v36 = vand.u32 4294901760, %v6776_v25 }
 0x559   : > { %4597 = vmatprep.subr.mxu0 %v5116_v0  ;;  %4640 = vmatprep.subr.mxu1 %v5116_v0 }
 0x55a   : > { %4598 = vmatpush3.msra.mxu0 %v6624_v6  ;;  %4641 = vmatpush3.msra.mxu1 %v6633_v15 }
 0x55b   : > { %4599 = vmatprep.subr.mxu0 %v5116_v0  ;;  %4642 = vmatprep.subr.mxu1 %v5116_v0 }
 0x55c   : > { %4600 = vmatpush3.msra.mxu0 %v6627_v31  ;;  %4643 = vmatpush3.msra.mxu1 %v6643_v19 }
 0x55d   : > { %4601 = vmatprep.subr.mxu0 %v5116_v0  ;;  %4644 = vmatprep.subr.mxu1 %v5116_v0 }
 0x55e   : > { %4602 = vmatpush3.msra.mxu0 %v6630_v38  ;;  %4645 = vmatpush3.msra.mxu1 %v6690_v41 }
 0x55f   : > { %4603 = vmatprep.subr.mxu0 %v5116_v0  ;;  %4646 = vmatprep.subr.mxu1 %v5116_v0 }
 0x560   : > { %4604 = vmatpush3.msra.mxu0 %v6640_v55  ;;  %4647 = vmatpush3.msra.mxu1 %v6698_v24 }
 0x561   : > { %4605 = vmatprep.subr.mxu0 %v5116_v0  ;;  %4648 = vmatprep.subr.mxu1 %v5116_v0 }
 0x562   : > { %4606 = vmatpush3.msra.mxu0 %v6649_v9  ;;  %4649 = vmatpush3.msra.mxu1 %v6707_v20 }
 0x563   : > { %4607 = vmatprep.subr.mxu0 %v5116_v0  ;;  %4650 = vmatprep.subr.mxu1 %v5116_v0 }
 0x564   : > { %4608 = vmatpush3.msra.mxu0 %v6658_v61  ;;  %4651 = vmatpush3.msra.mxu1 %v6719_v10 }
 0x565   : > { %4609 = vmatprep.subr.mxu0 %v5116_v0  ;;  %4652 = vmatprep.subr.mxu1 %v5116_v0 }
 0x566   : > { %4610 = vmatpush3.msra.mxu0 %v6696_v23  ;;  %4653 = vmatpush3.msra.mxu1 %v6733_v54 }
 0x567   : > { %4611 = vmatprep.subr.mxu0 %v5116_v0  ;;  %4654 = vmatprep.subr.mxu1 %v5116_v0 }
 0x568   : > { %4612 = vmatpush3.msra.mxu0 %v6705_v44  ;;  %4655 = vmatpush3.msra.mxu1 %v6740_v63 }
 0x569   : > { %4613 = vmatprep.subr.mxu0 %v5116_v0  ;;  %4656 = vmatprep.subr.mxu1 %v5116_v0 }
 0x56a   : > { %4614 = vmatpush3.msra.mxu0 %v6717_v21  ;;  %4657 = vmatpush3.msra.mxu1 %v6753_v28 }
 0x56b   : > { %4615 = vmatprep.subr.mxu0 %v5116_v0  ;;  %4658 = vmatprep.subr.mxu1 %v5116_v0 }
 0x56c   : > { %4616 = vmatpush3.msra.mxu0 %v6729_v37  ;;  %4659 = vmatpush3.msra.mxu1 %v6763_v26 }
 0x56d   : > { %4617 = vmatprep.subr.mxu0 %v5116_v0  ;;  %4661 = vmatmul.mubr.f32.vlgmr.msra.gmra.mxu1 %v2662_v34 }
 0x56e   : > { %4698 = vmatprep.subr.mxu1 %v5116_v0  ;;  %4618 = vmatpush3.msra.mxu0 %v6744_v49 }
 0x56f   : > { %4699 = vmatpush3.msra.mxu1 %v6601_v11  ;;  %4619 = vmatprep.subr.mxu0 %v5116_v0  ;;  %v7108_v11 = vand.u32 4294901760, %v6696_v23 }
 0x570   : > { %4700 = vmatprep.subr.mxu1 %v5116_v0  ;;  %4620 = vmatpush3.msra.mxu0 %v6751_v27 }
 0x571   : > { %4701 = vmatpush3.msra.mxu1 %v6606_v13  ;;  %4621 = vmatprep.subr.mxu0 %v5116_v0  ;;  %v7110_v13 = vand.u32 4294901760, %v6717_v21 }
 0x572   : > { %4702 = vmatprep.subr.mxu1 %v5116_v0  ;;  %4622 = vmatpush3.msra.mxu0 %v6761_v39 }
 0x573   : > { %4703 = vmatpush3.msra.mxu1 %v6609_v51  ;;  %4623 = vmatprep.subr.mxu0 %v5116_v0  ;;  %v7111_v51 = vand.u32 4294901760, %v6729_v37 }
 0x574   : > { %4704 = vmatprep.subr.mxu1 %v5116_v0  ;;  %4624 = vmatpush3.msra.mxu0 %v6776_v25 }
 0x575   : > { %4625 = vmatprep.mubr.msk.f32.mxu0 %vm5117_vm0, %v5116_v0  ;;  %4705 = vmatpush3.msra.mxu1 %v6611_v62  ;;  %v7112_v62 = vand.u32 4294901760, %v6744_v49 }
 0x576   : > { %4626 = vmatmul.mubr.f32.vlgmr.msra.gmra.mxu0 %v6798_v40  ;;  %4663 = vmatprep.subr.mxu0 %v5116_v0 }
 0x577   : > { %4706 = vmatprep.subr.mxu1 %v5116_v0  ;;  %4664 = vmatpush3.msra.mxu0 %v2673_v33  ;;  %v7115_v33 = vand.u32 4294901760, %v6761_v39 }
 0x578   : > { %4707 = vmatpush3.msra.mxu1 %v6613_v3  ;;  %4665 = vmatprep.subr.mxu0 %v5116_v0  ;;  %v7114_v3 = vand.u32 4294901760, %v6751_v27 }
 0x579   : > { %4708 = vmatprep.subr.mxu1 %v5116_v0  ;;  %4666 = vmatpush3.msra.mxu0 %v2680_v48 }
 0x57a   : > { %4709 = vmatpush3.msra.mxu1 %v6621_v4  ;;  %4667 = vmatprep.subr.mxu0 %v5116_v0 }
 0x57b   : > { %4710 = vmatprep.subr.mxu1 %v5116_v0  ;;  %4668 = vmatpush3.msra.mxu0 %v2687_v32 }
 0x57c   : > { %4711 = vmatpush3.msra.mxu1 %v6633_v15  ;;  %4669 = vmatprep.subr.mxu0 %v5116_v0 }
 0x57d   : > { %4712 = vmatprep.subr.mxu1 %v5116_v0  ;;  %4670 = vmatpush3.msra.mxu0 %v2694_v52 }
 0x57e   : > { %4713 = vmatpush3.msra.mxu1 %v6643_v19  ;;  %4671 = vmatprep.subr.mxu0 %v5116_v0 }
 0x57f   : > { %4714 = vmatprep.subr.mxu1 %v5116_v0  ;;  %4672 = vmatpush3.msra.mxu0 %v2701_v7 }
 0x580   : > { %4715 = vmatpush3.msra.mxu1 %v6690_v41  ;;  %4673 = vmatprep.subr.mxu0 %v5116_v0 }
 0x581   : > { %4716 = vmatprep.subr.mxu1 %v5116_v0  ;;  %4674 = vmatpush3.msra.mxu0 %v2708_v59 }
 0x582   : > { %4717 = vmatpush3.msra.mxu1 %v6698_v24  ;;  %4675 = vmatprep.subr.mxu0 %v5116_v0 }
 0x583   : > { %4718 = vmatprep.subr.mxu1 %v5116_v0  ;;  %4676 = vmatpush3.msra.mxu0 %v2715_v17 }
 0x584   : > { %4719 = vmatpush3.msra.mxu1 %v6707_v20  ;;  %4677 = vmatprep.subr.mxu0 %v5116_v0 }
 0x585   : > { %4720 = vmatprep.subr.mxu1 %v5116_v0  ;;  %4678 = vmatpush3.msra.mxu0 %v2722_v29 }
 0x586   : > { %4721 = vmatpush3.msra.mxu1 %v6719_v10  ;;  %4679 = vmatprep.subr.mxu0 %v5116_v0 }
 0x587   : > { %4722 = vmatprep.subr.mxu1 %v5116_v0  ;;  %4680 = vmatpush3.msra.mxu0 %v7108_v11 }
 0x588   : > { %4723 = vmatpush3.msra.mxu1 %v6733_v54  ;;  %4681 = vmatprep.subr.mxu0 %v5116_v0 }
 0x589   : > { %4724 = vmatprep.subr.mxu1 %v5116_v0  ;;  %4682 = vmatpush3.msra.mxu0 %v7109_v8 }
 0x58a   : > { %4725 = vmatpush3.msra.mxu1 %v6740_v63  ;;  %4683 = vmatprep.subr.mxu0 %v5116_v0 }
 0x58b   : > { %4726 = vmatprep.subr.mxu1 %v5116_v0  ;;  %4684 = vmatpush3.msra.mxu0 %v7110_v13 }
 0x58c   : > { %4727 = vmatpush3.msra.mxu1 %v6753_v28  ;;  %4685 = vmatprep.subr.mxu0 %v5116_v0 }
 0x58d   : > { %4728 = vmatprep.subr.mxu1 %v5116_v0  ;;  %4686 = vmatpush3.msra.mxu0 %v7111_v51 }
 0x58e   : > { %4729 = vmatpush3.msra.mxu1 %v6763_v26  ;;  %4730 = vmatprep.mubr.msk.f32.mxu1 %vm5117_vm0, %v5116_v0 }
 0x58f   : > { %4687 = vmatprep.subr.mxu0 %v5116_v0  ;;  %4731 = vmatmul.mubr.f32.vlgmr.msra.gmra.mxu1 %v6795_v50 }
 0x590   : > { %4688 = vmatpush3.msra.mxu0 %v7112_v62  ;;  %4695 = vmatprep.mubr.msk.f32.mxu0 %vm5117_vm0, %v5116_v0 }
 0x591   : > { %4689 = vmatprep.subr.mxu0 %v5116_v0 }
 0x592   : > { %4690 = vmatpush3.msra.mxu0 %v7114_v3 }
 0x593   : > { %4691 = vmatprep.subr.mxu0 %v5116_v0 }
 0x594   : > { %4692 = vmatpush3.msra.mxu0 %v7115_v33 }
 0x595   : > { %4693 = vmatprep.subr.mxu0 %v5116_v0 }
 0x596   : > { %4694 = vmatpush3.msra.mxu0 %v7116_v36 }
 0x597   : > { %4696 = vmatmul.mubr.f32.vlgmr.msra.gmra.mxu0 %v6795_v50 }
 0x598   : > { %5009 = shalt.err (!%p5006_p10)
}
 0x599   : > { %s5010_s15 = scalar_lea.hbm %s3253_s7, 128  ;;  %s5014_s29 = scalar_lea.hbm %s7117_s5, 256 }
 0x59a   : > { %p5011_p8 = scmp.ne.s32.totalorder %s3253_s7, %s5010_s15  ;;  %p5015_p12 = scmp.lt.s32.totalorder %s3253_s7, %s7117_s5 }
 0x59b   : > { %p5016_p7 = scmp.lt.s32.totalorder %s5014_s29, %s5010_s15 }
 0x59c   : > { %p5012_p9 = pnand %p5011_p8, %p7118_p5 }
 0x59d   : > { %p5017_p0 = por %p5016_p7, %p5015_p12 }
 0x59e   : > { %p5013_p11 = pneg %p5012_p9 }
 0x5a0   : > { %p5018_p3 = pnand %p5017_p0, %p5013_p11 }
 0x5a2   : > { %5021 = shalt.err (!%p5018_p3)
}
 0x5a3   : > { %4750 = dma.vmem_to_hbm [thread:$0]  (%p7118_p5), %s3256_s21, 128, %s3253_s7, %s3229_s9   ;;  %v4831_v24 = vld [vmem:[%s445_s27] sm:$0xff] }
 0x5a4   : > { %s7119_s23 = sld [smem:[#allocation32_spill]]  ;;  %s532_s26 = scalar_lea.vmem [#allocation13], %s5419_s24 }
 0x5a5   : > { %s3242_s7 = sshll.u32 %s532_s26, 4  ;;  %s7120_s30 = sld [smem:[#allocation33_spill]]  ;;  %s3243_s7 = int_to_ptr.vmem [resolvable:$true] %s3242_s7 }
 0x5a6   : > { %s3224_s22 = scalar_lea.sflag [#allocation4], %s5416_s13  ;;  %s5022_s10 = scalar_lea.vmem %s3243_s7, 128 }
 0x5a7   : > { %p5023_p2 = scmp.ne.s32.totalorder %s3243_s7, %s5022_s10  ;;  %s5120_s15 = smov [#allocation13]  }
 0x5a8   : > { %s5026_s19 = sshll.u32 %s5120_s15, 4  ;;  %s5027_s19 = int_to_ptr.vmem [resolvable:$false] %s5026_s19 }
 0x5a9   : > { %p5024_p13 = pnand %p5023_p2, %p7118_p5  ;;  %s5028_s24 = scalar_lea.vmem %s5027_s19, 256 }
 0x5aa   : > { %v3476_v19 = vld [vmem:[%s7119_s23] ss:$0 sm:$0xff]  ;;  %p5029_p4 = scmp.lt.s32.totalorder %s3243_s7, %s5027_s19  ;;  %p5030_p6 = scmp.lt.s32.totalorder %s5028_s24, %s5022_s10 }
 0x5ab   : > { %s3240_s18 = scalar_lea.hbm %s7120_s30, %s3479_s25  ;;  %p5025_p1 = pneg %p5024_p13 }
 0x5ac   : > { %p5031_p10 = por %p5030_p6, %p5029_p4 }
 0x5ae   : > { %p5032_p8 = pnand %p5031_p10, %p5025_p1 }
 0x60d   : > { %v2817_v0 = vpop.f32.mrf.mxu1 }
 0x60f   : > { %v4592_v4 = vpop.f32.mrf.mxu1 }
 0x615   : > { %v2666_v6 = vpop.f32.mrf.mxu0 }
 0x616   : > { %v2667_v32 = vadd.f32 %v3476_v19, %v2666_v6 }
 0x617   : > { %v4557_v31 = vpop.f32.mrf.mxu0 }
 0x618   : > { %v2818_v7 = vadd.f32 %v2817_v0, %v2667_v32 }
 0x62d   : > { %v3010_v38 = vpop.f32.mrf.mxu1 }
 0x62f   : > { %v4662_v15 = vpop.f32.mrf.mxu1 }
 0x636   : > { %v2921_v48 = vpop.f32.mrf.mxu0 }
 0x637   : > { %v2922_v59 = vadd.f32 %v2921_v48, %v2818_v7 }
 0x638   : > { %v4627_v55 = vpop.f32.mrf.mxu0 }
 0x639   : > { %v3011_v61 = vadd.f32 %v3010_v38, %v2922_v59 }
 0x64f   : > { %v3216_v52 = vpop.f32.mrf.mxu1 }
 0x651   : > { %v4732_v9 = vpop.f32.mrf.mxu1 }
 0x657   : > { %v3129_v17 = vpop.f32.mrf.mxu0 }
 0x658   : > { %v3130_v29 = vadd.f32 %v3129_v17, %v3011_v61 }
 0x659   : > { %v4697_v41 = vpop.f32.mrf.mxu0 }
 0x65a   : > { %v3217_v23 = vadd.f32 %v3216_v52, %v3130_v29 }
 0x65c   : > { %v3220_v50 = vadd.f32 %v4831_v24, %v3217_v23 }
 0x65e   : > { %v3221_v44 = vmul.f32 0.70710677, %v3220_v50 }
 0x660   : > { %3222 = vst [vmem:[%s532_s26] sm:$0xff] %v3221_v44 }
 0x661   : > { %5035 = shalt.err (!%p5032_p8)
}
 0x662   : > { %s5036_s17 = scalar_lea.hbm %s3240_s18, 128  ;;  %s5040_s25 = scalar_lea.hbm %s7120_s30, 256 }
 0x663   : > { %p5037_p9 = scmp.ne.s32.totalorder %s3240_s18, %s5036_s17  ;;  %p5041_p7 = scmp.lt.s32.totalorder %s3240_s18, %s7120_s30 }
 0x664   : > { %p5042_p0 = scmp.lt.s32.totalorder %s5040_s25, %s5036_s17 }
 0x665   : > { %p5038_p11 = pnand %p5037_p9, %p7118_p5 }
 0x666   : > { %p5043_p3 = por %p5042_p0, %p5041_p7 }
 0x667   : > { %p5039_p12 = pneg %p5038_p11 }
 0x669   : > { %p5044_p2 = pnand %p5043_p3, %p5039_p12 }
 0x66b   : > { %5047 = shalt.err (!%p5044_p2)
}
 0x66c   : > { %4749 = dma.vmem_to_hbm [thread:$0]  (%p7118_p5), %s3243_s7, 128, %s3240_s18, %s3224_s22  }
 0x66d PF: > { %s7121_s12 = sld [smem:[#allocation23_spill]]  ;;  %p7124_p1 = scmp.ge.s32.totalorder %s5106_s16, 2 }
 0x66e   : > { %s7122_s1 = sld [smem:[#allocation25_spill]] }
 0x673   : > { %s3267_s8 = sand.u32 1, %s7121_s12  }
 0x674   : > { %p7123_p13 = scmp.ne.s32.totalorder %s7122_s1, 0  ;;  %s3268_s20 = scalar_lea.sflag [#allocation4], %s3267_s8 }
 0x676   : > { %p4774_p4 = pnand %p7124_p1, %p7123_p13 }
 0x678   : > { %p4775_p6 = pneg %p4774_p4 }
 0x67a   : > { %5085 = dma.done.wait (%p4775_p6), %s3268_s20, 128  }
 0x67b   : > { %5087 = vsyncadd (%p4775_p6), %s3268_s20, 4294967168  ;;  %s3277_s23 = scalar_lea.sflag [#allocation15], %s3267_s8 }
 0x67c   : > { %5089 = dma.done.wait (%p4775_p6), %s3277_s23, 128  }
 0x67d   : > { %5091 = vsyncadd (%p4775_p6), %s3277_s23, 4294967168  ;;  %s7125_s16 = sld [smem:[#allocation26_spill]]  ;;  %s7128_s13 = smov %s5098_s14 }
 0x67e   : > { %s7126_s26 = sld [smem:[#allocation24_spill]] }
 0x67f   : > { %s7127_s15 = sld [smem:[#allocation27_spill]] }
 0x683   : > { %p34_p5 = scmp.ge.s32.totalorder %s7125_s16, 4  }
 0x684   : > { %s7129_s14 = smov %s7126_s26 }
 0x685   :  { %36 = sbr.rel (!%p34_p5) target bundleno = 19 (0x13), region = 166 }
 0x68a   :  { %3282 = vsyncpa [#allocation3], 1 }
 0x68b   :  { %3284 = vsyncpa [#allocation3 + $0x1], 1 }
 0x68c   :  { %3285 = vsyncpa [#allocation6], 1 }
 0x68d   :  { %3287 = vsyncpa [#allocation6 + $0x1], 1 }
 0x68e   :  { %3288 = vsyncpa [#allocation9], 1 }
 0x68f   :  { %3290 = vsyncpa [#allocation9 + $0x1], 1 }
 0x690   :  { %3291 = vsyncpa [#allocation12], 1 }
 0x691   :  { %3292 = vsyncpa [#allocation4], 1 }
 0x692   :  { %3294 = vsyncpa [#allocation4 + $0x1], 1 }
 0x693   :  { %3295 = vsyncpa [#allocation15], 1 }
 0x694   :  { %3297 = vsyncpa [#allocation15 + $0x1], 1 }

</bundles_post_ra>
